<compile_context>
chip_gen: v7x
topology: tpu7x:2x2x1
jax: 0.10.0
libtpu: 0.0.40
codegen_flags: <defaults>
</compile_context>

<pallas_src>
import math

import jax
import jax.numpy as jnp
from jax.experimental import pallas as pl
from jax.experimental.pallas import tpu as pltpu

# ---------------- small synthetic "BERT" config ----------------
VOCAB = 100
HIDDEN = 32
N_LAYERS = 2
N_HEADS = 4
HEAD_DIM = HIDDEN // N_HEADS
INTERMEDIATE = 64
MAX_POS = 16
TYPE_VOCAB = 2
LN_EPS = 1e-12
NORM_EPS = 1e-12  # F.normalize default eps
ATTN_SCALE = 1.0 / math.sqrt(HEAD_DIM)

# hyponet param_shapes (synthetic): total_params = sum(shape0*shape1)
PARAM_SHAPES = {"layer0.wb": (4, 8), "layer1.wb": (8, 2)}
TOTAL_PARAMS = sum(a * b for a, b in PARAM_SHAPES.values())


# ---------------- in-kernel helpers (value-level, traced into the kernel) ----
def _dot_bf16(a, b):
    # bf16 operands, f32 accumulation (MXU fast path on v6e/v7x).
    return jnp.dot(a.astype(jnp.bfloat16), b.astype(jnp.bfloat16),
                   preferred_element_type=jnp.float32)


def _dot_nt_bf16(a, b):
    # a @ b.T (contract last dims) without materializing a transpose.
    return jax.lax.dot_general(
        a.astype(jnp.bfloat16), b.astype(jnp.bfloat16),
        dimension_numbers=(((1,), (1,)), ((), ())),
        preferred_element_type=jnp.float32)


def _layernorm(x, g, b):
    mean = jnp.mean(x, axis=-1, keepdims=True)
    var = jnp.mean((x - mean) ** 2, axis=-1, keepdims=True)
    return (x - mean) * jax.lax.rsqrt(var + LN_EPS) * g + b


def _gelu_exact(x):
    # exact (erf-based) GELU, matching HF BERT "gelu"
    return 0.5 * x * (1.0 + jax.lax.erf(x * (1.0 / math.sqrt(2.0))))


# ---------------- single fused kernel: one grid step == one batch example ----
def _bert_fused_kernel(
    emb_ref, mask_ref, embg_ref, embb_ref,
    wqkv_ref, bqkv_ref, wo_ref, bo_ref, ln1g_ref, ln1b_ref,
    wi_ref, bi_ref, wo2_ref, bo2_ref, ln2g_ref, ln2b_ref,
    regw_ref, regb_ref,
    out_ref,
):
    # embeddings -> LayerNorm (no zero residual buffer)
    h = _layernorm(emb_ref[0], embg_ref[...], embb_ref[...])     # [S, H] f32
    bias = mask_ref[0]                                           # [1, S] additive mask

    for l in range(N_LAYERS):                                    # static unroll
        # fused QKV projection: [S, H] @ [H, 3H]
        qkv = _dot_bf16(h, wqkv_ref[l]) + bqkv_ref[l]            # [S, 3H]
        q = qkv[:, 0:HIDDEN]
        k = qkv[:, HIDDEN:2 * HIDDEN]
        v = qkv[:, 2 * HIDDEN:3 * HIDDEN]

        # all heads of this example handled inside the same grid step
        ctx_heads = []
        for hd in range(N_HEADS):
            lo = hd * HEAD_DIM
            qh = q[:, lo:lo + HEAD_DIM]                          # [S, Dh]
            kh = k[:, lo:lo + HEAD_DIM]
            vh = v[:, lo:lo + HEAD_DIM]
            s = _dot_nt_bf16(qh, kh) * ATTN_SCALE + bias         # [S, S]
            s = s - jnp.max(s, axis=-1, keepdims=True)
            p = jnp.exp(s)
            p = p / jnp.sum(p, axis=-1, keepdims=True)
            ctx_heads.append(_dot_bf16(p, vh))                   # [S, Dh]
        ctx = jnp.concatenate(ctx_heads, axis=-1)                # [S, H]

        # attention output projection + residual + LayerNorm (fused epilogue)
        attn_out = _dot_bf16(ctx, wo_ref[l]) + bo_ref[l]
        h = _layernorm(attn_out + h, ln1g_ref[l], ln1b_ref[l])

        # FFN (GELU) + residual + LayerNorm (fused epilogue)
        inter = _gelu_exact(_dot_bf16(h, wi_ref[l]) + bi_ref[l])  # [S, I]
        ffn_out = _dot_bf16(inter, wo2_ref[l]) + bo2_ref[l]
        h = _layernorm(ffn_out + h, ln2g_ref[l], ln2b_ref[l])

    # regression head on the [CLS] token (kept f32: output is L2-normalized)
    cls = h[0:1, :]                                              # [1, H]
    reg = jnp.dot(cls, regw_ref[...],
                  preferred_element_type=jnp.float32) + regb_ref[...]  # [1, P]

    # per-chunk F.normalize(dim=1) epilogue
    chunks = []
    start = 0
    for _, shape in PARAM_SHAPES.items():
        n = shape[0] * shape[1]
        c = reg[:, start:start + n]
        nrm = jnp.sqrt(jnp.sum(c * c, axis=-1, keepdims=True))
        chunks.append(c / jnp.maximum(nrm, NORM_EPS))
        start += n
    out_ref[0] = jnp.concatenate(chunks, axis=-1)                # [1, P]


# ---------------- deterministic parameter init (fused / stacked layout) ------
def init_params(key):
    keys = iter(jax.random.split(key, 64))

    def nrm(shape, scale=0.02):
        return scale * jax.random.normal(next(keys), shape, dtype=jnp.float32)

    wq, wk, wv, wo, wi, wo2 = [], [], [], [], [], []
    for _ in range(N_LAYERS):
        wq.append(nrm((HIDDEN, HIDDEN)))
        wk.append(nrm((HIDDEN, HIDDEN)))
        wv.append(nrm((HIDDEN, HIDDEN)))
        wo.append(nrm((HIDDEN, HIDDEN)))
        wi.append(nrm((HIDDEN, INTERMEDIATE)))
        wo2.append(nrm((INTERMEDIATE, HIDDEN)))

    params = {
        "word_emb": nrm((VOCAB, HIDDEN)),
        "pos_emb": nrm((MAX_POS, HIDDEN)),
        "type_emb": nrm((TYPE_VOCAB, HIDDEN)),
        "emb_ln_g": jnp.ones((1, HIDDEN), jnp.float32),
        "emb_ln_b": jnp.zeros((1, HIDDEN), jnp.float32),
        # stacked encoder weights, QKV fused along the output axis
        "wqkv": jnp.stack([jnp.concatenate([a, b, c], axis=1)
                           for a, b, c in zip(wq, wk, wv)]),     # [L, H, 3H]
        "bqkv": jnp.zeros((N_LAYERS, 1, 3 * HIDDEN), jnp.float32),
        "wo": jnp.stack(wo),                                     # [L, H, H]
        "bo": jnp.zeros((N_LAYERS, 1, HIDDEN), jnp.float32),
        "ln1_g": jnp.ones((N_LAYERS, 1, HIDDEN), jnp.float32),
        "ln1_b": jnp.zeros((N_LAYERS, 1, HIDDEN), jnp.float32),
        "wi": jnp.stack(wi),                                     # [L, H, I]
        "bi": jnp.zeros((N_LAYERS, 1, INTERMEDIATE), jnp.float32),
        "wo2": jnp.stack(wo2),                                   # [L, I, H]
        "bo2": jnp.zeros((N_LAYERS, 1, HIDDEN), jnp.float32),
        "ln2_g": jnp.ones((N_LAYERS, 1, HIDDEN), jnp.float32),
        "ln2_b": jnp.zeros((N_LAYERS, 1, HIDDEN), jnp.float32),
        "reg_w": nrm((HIDDEN, TOTAL_PARAMS)),
        "reg_b": jnp.zeros((1, TOTAL_PARAMS), jnp.float32),
    }
    return params


# ---------------- forward pass (== BertRegressionModel.forward) --------------
def bert_regression_forward(params, input_ids, attention_mask):
    B, S = input_ids.shape
    H, I, L, P = HIDDEN, INTERMEDIATE, N_LAYERS, TOTAL_PARAMS

    # embeddings (gather = glue in plain JAX)
    pos_ids = jnp.arange(S)
    emb = (params["word_emb"][input_ids]
           + params["pos_emb"][pos_ids][None, :, :]
           + params["type_emb"][0][None, None, :]).astype(jnp.float32)   # [B,S,H]

    # extended attention mask: (1 - mask) * -10000, broadcast over query axis
    mask_bias = ((1.0 - attention_mask.astype(jnp.float32)) * -10000.0
                 ).reshape(B, 1, S)

    const2 = lambda b: (0, 0)
    const3 = lambda b: (0, 0, 0)

    out = pl.pallas_call(
        _bert_fused_kernel,
        out_shape=jax.ShapeDtypeStruct((B, 1, P), jnp.float32),
        grid=(B,),
        in_specs=[
            pl.BlockSpec((1, S, H), lambda b: (b, 0, 0)),     # emb
            pl.BlockSpec((1, 1, S), lambda b: (b, 0, 0)),     # mask bias
            pl.BlockSpec((1, H), const2),                     # emb_ln_g
            pl.BlockSpec((1, H), const2),                     # emb_ln_b
            pl.BlockSpec((L, H, 3 * H), const3),              # wqkv
            pl.BlockSpec((L, 1, 3 * H), const3),              # bqkv
            pl.BlockSpec((L, H, H), const3),                  # wo
            pl.BlockSpec((L, 1, H), const3),                  # bo
            pl.BlockSpec((L, 1, H), const3),                  # ln1_g
            pl.BlockSpec((L, 1, H), const3),                  # ln1_b
            pl.BlockSpec((L, H, I), const3),                  # wi
            pl.BlockSpec((L, 1, I), const3),                  # bi
            pl.BlockSpec((L, I, H), const3),                  # wo2
            pl.BlockSpec((L, 1, H), const3),                  # bo2
            pl.BlockSpec((L, 1, H), const3),                  # ln2_g
            pl.BlockSpec((L, 1, H), const3),                  # ln2_b
            pl.BlockSpec((H, P), const2),                     # reg_w
            pl.BlockSpec((1, P), const2),                     # reg_b
        ],
        out_specs=pl.BlockSpec((1, 1, P), lambda b: (b, 0, 0)),
        compiler_params=pltpu.CompilerParams(
            dimension_semantics=("parallel",)),               # 2 TCs on v7x
    )(
        emb, mask_bias,
        params["emb_ln_g"], params["emb_ln_b"],
        params["wqkv"], params["bqkv"],
        params["wo"], params["bo"],
        params["ln1_g"], params["ln1_b"],
        params["wi"], params["bi"],
        params["wo2"], params["bo2"],
        params["ln2_g"], params["ln2_b"],
        params["reg_w"], params["reg_b"],
    )

    reg = out[:, 0, :]                       # [B, P], already L2-normalized per chunk
    out_params = {}
    start = 0
    for name, shape in PARAM_SHAPES.items():
        end = start + shape[0] * shape[1]
        out_params[name] = reg[:, start:end]
        start = end
    # TODO(synk): hyponet.set_params / returning the hyponet object has no
    # kernel equivalent; we return the dict of normalized parameter chunks.
    return out_params


if __name__ == "__main__":
    key = jax.random.PRNGKey(0)
    pkey, dkey = jax.random.split(key, 2)
    params = init_params(pkey)

    B, S = 2, 8
    input_ids = jax.random.randint(dkey, (B, S), 0, VOCAB, dtype=jnp.int32)
    attention_mask = jnp.ones((B, S), dtype=jnp.int32)

    fwd = jax.jit(bert_regression_forward)
    out = fwd(params, input_ids, attention_mask)
    jax.block_until_ready(out)

    for name, shape in PARAM_SHAPES.items():
        assert out[name].shape == (B, shape[0] * shape[1])
    print("KERNEL_OK")
</pallas_src>

<mosaic_0001>
module attributes {stable_mosaic.version = 11 : i64} {
  func.func @_bert_fused_kernel(%arg0: i32, %arg1: memref<1x8x32xf32, #tpu.memory_space<vmem>>, %arg2: memref<1x1x8xf32, #tpu.memory_space<vmem>>, %arg3: memref<1x32xf32, #tpu.memory_space<vmem>>, %arg4: memref<1x32xf32, #tpu.memory_space<vmem>>, %arg5: memref<2x32x96xf32, #tpu.memory_space<vmem>>, %arg6: memref<2x1x96xf32, #tpu.memory_space<vmem>>, %arg7: memref<2x32x32xf32, #tpu.memory_space<vmem>>, %arg8: memref<2x1x32xf32, #tpu.memory_space<vmem>>, %arg9: memref<2x1x32xf32, #tpu.memory_space<vmem>>, %arg10: memref<2x1x32xf32, #tpu.memory_space<vmem>>, %arg11: memref<2x32x64xf32, #tpu.memory_space<vmem>>, %arg12: memref<2x1x64xf32, #tpu.memory_space<vmem>>, %arg13: memref<2x64x32xf32, #tpu.memory_space<vmem>>, %arg14: memref<2x1x32xf32, #tpu.memory_space<vmem>>, %arg15: memref<2x1x32xf32, #tpu.memory_space<vmem>>, %arg16: memref<2x1x32xf32, #tpu.memory_space<vmem>>, %arg17: memref<32x48xf32, #tpu.memory_space<vmem>>, %arg18: memref<1x48xf32, #tpu.memory_space<vmem>>, %arg19: memref<1x1x48xf32, #tpu.memory_space<vmem>>) attributes {dimension_semantics = [#tpu.dimension_semantics<parallel>], iteration_bounds = array<i64: 2>, scalar_prefetch = 0 : i64, scratch_operands = 0 : i64, tpu.core_type = #tpu.core_type<tc>, window_params = [{transform_indices = @transform_0, window_bounds = array<i64: 1, 8, 32>}, {transform_indices = @transform_1, window_bounds = array<i64: 1, 1, 8>}, {pipeline_mode = #tpu.pipeline_mode<synchronous>, transform_indices = @transform_2, window_bounds = array<i64: 1, 32>}, {pipeline_mode = #tpu.pipeline_mode<synchronous>, transform_indices = @transform_3, window_bounds = array<i64: 1, 32>}, {pipeline_mode = #tpu.pipeline_mode<synchronous>, transform_indices = @transform_4, window_bounds = array<i64: 2, 32, 96>}, {pipeline_mode = #tpu.pipeline_mode<synchronous>, transform_indices = @transform_5, window_bounds = array<i64: 2, 1, 96>}, {pipeline_mode = #tpu.pipeline_mode<synchronous>, transform_indices = @transform_6, window_bounds = array<i64: 2, 32, 32>}, {pipeline_mode = #tpu.pipeline_mode<synchronous>, transform_indices = @transform_7, window_bounds = array<i64: 2, 1, 32>}, {pipeline_mode = #tpu.pipeline_mode<synchronous>, transform_indices = @transform_8, window_bounds = array<i64: 2, 1, 32>}, {pipeline_mode = #tpu.pipeline_mode<synchronous>, transform_indices = @transform_9, window_bounds = array<i64: 2, 1, 32>}, {pipeline_mode = #tpu.pipeline_mode<synchronous>, transform_indices = @transform_10, window_bounds = array<i64: 2, 32, 64>}, {pipeline_mode = #tpu.pipeline_mode<synchronous>, transform_indices = @transform_11, window_bounds = array<i64: 2, 1, 64>}, {pipeline_mode = #tpu.pipeline_mode<synchronous>, transform_indices = @transform_12, window_bounds = array<i64: 2, 64, 32>}, {pipeline_mode = #tpu.pipeline_mode<synchronous>, transform_indices = @transform_13, window_bounds = array<i64: 2, 1, 32>}, {pipeline_mode = #tpu.pipeline_mode<synchronous>, transform_indices = @transform_14, window_bounds = array<i64: 2, 1, 32>}, {pipeline_mode = #tpu.pipeline_mode<synchronous>, transform_indices = @transform_15, window_bounds = array<i64: 2, 1, 32>}, {pipeline_mode = #tpu.pipeline_mode<synchronous>, transform_indices = @transform_16, window_bounds = array<i64: 32, 48>}, {pipeline_mode = #tpu.pipeline_mode<synchronous>, transform_indices = @transform_17, window_bounds = array<i64: 1, 48>}, {transform_indices = @transform_18, window_bounds = array<i64: 1, 1, 48>}]} {
    %c0 = arith.constant 0 : index
    %c0_0 = arith.constant 0 : index
    %c0_1 = arith.constant 0 : index
    %0 = vector.load %arg1[%c0, %c0_0, %c0_1] : memref<1x8x32xf32, #tpu.memory_space<vmem>>, vector<1x8x32xf32>
    %1 = vector.shape_cast %0 : vector<1x8x32xf32> to vector<8x32xf32>
    %c0_2 = arith.constant 0 : index
    %c0_3 = arith.constant 0 : index
    %2 = vector.load %arg3[%c0_2, %c0_3] : memref<1x32xf32, #tpu.memory_space<vmem>>, vector<1x32xf32>
    %c0_4 = arith.constant 0 : index
    %c0_5 = arith.constant 0 : index
    %3 = vector.load %arg4[%c0_4, %c0_5] : memref<1x32xf32, #tpu.memory_space<vmem>>, vector<1x32xf32>
    %cst = arith.constant dense<0.000000e+00> : vector<8xf32>
    %4 = vector.multi_reduction <add>, %1, %cst [1] : vector<8x32xf32> to vector<8xf32>
    %5 = vector.shape_cast %4 : vector<8xf32> to vector<8x1xf32>
    %cst_6 = arith.constant 3.200000e+01 : f32
    %6 = vector.broadcast %cst_6 : f32 to vector<8x1xf32>
    %7 = arith.divf %5, %6 : vector<8x1xf32>
    %8 = vector.broadcast %7 : vector<8x1xf32> to vector<8x32xf32>
    %9 = arith.subf %1, %8 : vector<8x32xf32>
    %10 = arith.mulf %9, %9 : vector<8x32xf32>
    %cst_7 = arith.constant dense<0.000000e+00> : vector<8xf32>
    %11 = vector.multi_reduction <add>, %10, %cst_7 [1] : vector<8x32xf32> to vector<8xf32>
    %12 = vector.shape_cast %11 : vector<8xf32> to vector<8x1xf32>
    %cst_8 = arith.constant 3.200000e+01 : f32
    %13 = vector.broadcast %cst_8 : f32 to vector<8x1xf32>
    %14 = arith.divf %12, %13 : vector<8x1xf32>
    %15 = vector.broadcast %7 : vector<8x1xf32> to vector<8x32xf32>
    %16 = arith.subf %1, %15 : vector<8x32xf32>
    %cst_9 = arith.constant 9.99999996E-13 : f32
    %17 = vector.broadcast %cst_9 : f32 to vector<8x1xf32>
    %18 = arith.addf %14, %17 : vector<8x1xf32>
    %19 = math.rsqrt %18 : vector<8x1xf32>
    %20 = vector.broadcast %19 : vector<8x1xf32> to vector<8x32xf32>
    %21 = arith.mulf %16, %20 : vector<8x32xf32>
    %22 = vector.broadcast %2 : vector<1x32xf32> to vector<8x32xf32>
    %23 = arith.mulf %21, %22 : vector<8x32xf32>
    %24 = vector.broadcast %3 : vector<1x32xf32> to vector<8x32xf32>
    %25 = arith.addf %23, %24 : vector<8x32xf32>
    %c0_10 = arith.constant 0 : index
    %c0_11 = arith.constant 0 : index
    %c0_12 = arith.constant 0 : index
    %26 = vector.load %arg2[%c0_10, %c0_11, %c0_12] : memref<1x1x8xf32, #tpu.memory_space<vmem>>, vector<1x1x8xf32>
    %27 = vector.shape_cast %26 : vector<1x1x8xf32> to vector<1x8xf32>
    %c0_13 = arith.constant 0 : index
    %c0_14 = arith.constant 0 : index
    %c0_15 = arith.constant 0 : index
    %28 = vector.load %arg5[%c0_13, %c0_14, %c0_15] : memref<2x32x96xf32, #tpu.memory_space<vmem>>, vector<1x32x96xf32>
    %29 = vector.shape_cast %28 : vector<1x32x96xf32> to vector<32x96xf32>
    %30 = arith.truncf %25 : vector<8x32xf32> to vector<8x32xbf16>
    %31 = arith.truncf %29 : vector<32x96xf32> to vector<32x96xbf16>
    %cst_16 = arith.constant dense<0.000000e+00> : vector<8x96xf32>
    %32 = tpu.matmul %30, %31, %cst_16 {dimension_numbers = #tpu.dot_dimension_numbers<[1], [0], [0], [1], [0, 0, 1, 1], [], []>} : vector<8x32xbf16>, vector<32x96xbf16>, vector<8x96xf32> -> vector<8x96xf32>
    %c0_17 = arith.constant 0 : index
    %c0_18 = arith.constant 0 : index
    %c0_19 = arith.constant 0 : index
    %33 = vector.load %arg6[%c0_17, %c0_18, %c0_19] : memref<2x1x96xf32, #tpu.memory_space<vmem>>, vector<1x1x96xf32>
    %34 = vector.shape_cast %33 : vector<1x1x96xf32> to vector<1x96xf32>
    %35 = vector.broadcast %34 : vector<1x96xf32> to vector<8x96xf32>
    %36 = arith.addf %32, %35 : vector<8x96xf32>
    %37 = vector.extract_strided_slice %36 {offsets = [0, 0], sizes = [8, 32], strides = [1, 1]} : vector<8x96xf32> to vector<8x32xf32>
    %38 = vector.extract_strided_slice %36 {offsets = [0, 32], sizes = [8, 32], strides = [1, 1]} : vector<8x96xf32> to vector<8x32xf32>
    %39 = vector.extract_strided_slice %36 {offsets = [0, 64], sizes = [8, 32], strides = [1, 1]} : vector<8x96xf32> to vector<8x32xf32>
    %40 = vector.extract_strided_slice %37 {offsets = [0, 0], sizes = [8, 8], strides = [1, 1]} : vector<8x32xf32> to vector<8x8xf32>
    %41 = vector.extract_strided_slice %38 {offsets = [0, 0], sizes = [8, 8], strides = [1, 1]} : vector<8x32xf32> to vector<8x8xf32>
    %42 = vector.extract_strided_slice %39 {offsets = [0, 0], sizes = [8, 8], strides = [1, 1]} : vector<8x32xf32> to vector<8x8xf32>
    %43 = arith.truncf %40 : vector<8x8xf32> to vector<8x8xbf16>
    %44 = arith.truncf %41 : vector<8x8xf32> to vector<8x8xbf16>
    %cst_20 = arith.constant dense<0.000000e+00> : vector<8x8xf32>
    %45 = tpu.matmul %43, %44, %cst_20 {dimension_numbers = #tpu.dot_dimension_numbers<[1], [1], [0], [0], [0, 0, 1, 0], [], []>} : vector<8x8xbf16>, vector<8x8xbf16>, vector<8x8xf32> -> vector<8x8xf32>
    %cst_21 = arith.constant 0.353553385 : f32
    %46 = vector.broadcast %cst_21 : f32 to vector<8x8xf32>
    %47 = arith.mulf %45, %46 : vector<8x8xf32>
    %48 = vector.broadcast %27 : vector<1x8xf32> to vector<8x8xf32>
    %49 = arith.addf %47, %48 : vector<8x8xf32>
    %cst_22 = arith.constant dense<0xFF800000> : vector<8xf32>
    %50 = vector.multi_reduction <maximumf>, %49, %cst_22 [1] : vector<8x8xf32> to vector<8xf32>
    %51 = vector.shape_cast %50 : vector<8xf32> to vector<8x1xf32>
    %52 = vector.broadcast %51 : vector<8x1xf32> to vector<8x8xf32>
    %53 = arith.subf %49, %52 : vector<8x8xf32>
    %54 = math.exp %53 : vector<8x8xf32>
    %cst_23 = arith.constant dense<0.000000e+00> : vector<8xf32>
    %55 = vector.multi_reduction <add>, %54, %cst_23 [1] : vector<8x8xf32> to vector<8xf32>
    %56 = vector.shape_cast %55 : vector<8xf32> to vector<8x1xf32>
    %57 = vector.broadcast %56 : vector<8x1xf32> to vector<8x8xf32>
    %58 = arith.divf %54, %57 : vector<8x8xf32>
    %59 = arith.truncf %58 : vector<8x8xf32> to vector<8x8xbf16>
    %60 = arith.truncf %42 : vector<8x8xf32> to vector<8x8xbf16>
    %cst_24 = arith.constant dense<0.000000e+00> : vector<8x8xf32>
    %61 = tpu.matmul %59, %60, %cst_24 {dimension_numbers = #tpu.dot_dimension_numbers<[1], [0], [0], [1], [0, 0, 1, 1], [], []>} : vector<8x8xbf16>, vector<8x8xbf16>, vector<8x8xf32> -> vector<8x8xf32>
    %62 = vector.extract_strided_slice %37 {offsets = [0, 8], sizes = [8, 8], strides = [1, 1]} : vector<8x32xf32> to vector<8x8xf32>
    %63 = vector.extract_strided_slice %38 {offsets = [0, 8], sizes = [8, 8], strides = [1, 1]} : vector<8x32xf32> to vector<8x8xf32>
    %64 = vector.extract_strided_slice %39 {offsets = [0, 8], sizes = [8, 8], strides = [1, 1]} : vector<8x32xf32> to vector<8x8xf32>
    %65 = arith.truncf %62 : vector<8x8xf32> to vector<8x8xbf16>
    %66 = arith.truncf %63 : vector<8x8xf32> to vector<8x8xbf16>
    %cst_25 = arith.constant dense<0.000000e+00> : vector<8x8xf32>
    %67 = tpu.matmul %65, %66, %cst_25 {dimension_numbers = #tpu.dot_dimension_numbers<[1], [1], [0], [0], [0, 0, 1, 0], [], []>} : vector<8x8xbf16>, vector<8x8xbf16>, vector<8x8xf32> -> vector<8x8xf32>
    %cst_26 = arith.constant 0.353553385 : f32
    %68 = vector.broadcast %cst_26 : f32 to vector<8x8xf32>
    %69 = arith.mulf %67, %68 : vector<8x8xf32>
    %70 = vector.broadcast %27 : vector<1x8xf32> to vector<8x8xf32>
    %71 = arith.addf %69, %70 : vector<8x8xf32>
    %cst_27 = arith.constant dense<0xFF800000> : vector<8xf32>
    %72 = vector.multi_reduction <maximumf>, %71, %cst_27 [1] : vector<8x8xf32> to vector<8xf32>
    %73 = vector.shape_cast %72 : vector<8xf32> to vector<8x1xf32>
    %74 = vector.broadcast %73 : vector<8x1xf32> to vector<8x8xf32>
    %75 = arith.subf %71, %74 : vector<8x8xf32>
    %76 = math.exp %75 : vector<8x8xf32>
    %cst_28 = arith.constant dense<0.000000e+00> : vector<8xf32>
    %77 = vector.multi_reduction <add>, %76, %cst_28 [1] : vector<8x8xf32> to vector<8xf32>
    %78 = vector.shape_cast %77 : vector<8xf32> to vector<8x1xf32>
    %79 = vector.broadcast %78 : vector<8x1xf32> to vector<8x8xf32>
    %80 = arith.divf %76, %79 : vector<8x8xf32>
    %81 = arith.truncf %80 : vector<8x8xf32> to vector<8x8xbf16>
    %82 = arith.truncf %64 : vector<8x8xf32> to vector<8x8xbf16>
    %cst_29 = arith.constant dense<0.000000e+00> : vector<8x8xf32>
    %83 = tpu.matmul %81, %82, %cst_29 {dimension_numbers = #tpu.dot_dimension_numbers<[1], [0], [0], [1], [0, 0, 1, 1], [], []>} : vector<8x8xbf16>, vector<8x8xbf16>, vector<8x8xf32> -> vector<8x8xf32>
    %84 = vector.extract_strided_slice %37 {offsets = [0, 16], sizes = [8, 8], strides = [1, 1]} : vector<8x32xf32> to vector<8x8xf32>
    %85 = vector.extract_strided_slice %38 {offsets = [0, 16], sizes = [8, 8], strides = [1, 1]} : vector<8x32xf32> to vector<8x8xf32>
    %86 = vector.extract_strided_slice %39 {offsets = [0, 16], sizes = [8, 8], strides = [1, 1]} : vector<8x32xf32> to vector<8x8xf32>
    %87 = arith.truncf %84 : vector<8x8xf32> to vector<8x8xbf16>
    %88 = arith.truncf %85 : vector<8x8xf32> to vector<8x8xbf16>
    %cst_30 = arith.constant dense<0.000000e+00> : vector<8x8xf32>
    %89 = tpu.matmul %87, %88, %cst_30 {dimension_numbers = #tpu.dot_dimension_numbers<[1], [1], [0], [0], [0, 0, 1, 0], [], []>} : vector<8x8xbf16>, vector<8x8xbf16>, vector<8x8xf32> -> vector<8x8xf32>
    %cst_31 = arith.constant 0.353553385 : f32
    %90 = vector.broadcast %cst_31 : f32 to vector<8x8xf32>
    %91 = arith.mulf %89, %90 : vector<8x8xf32>
    %92 = vector.broadcast %27 : vector<1x8xf32> to vector<8x8xf32>
    %93 = arith.addf %91, %92 : vector<8x8xf32>
    %cst_32 = arith.constant dense<0xFF800000> : vector<8xf32>
    %94 = vector.multi_reduction <maximumf>, %93, %cst_32 [1] : vector<8x8xf32> to vector<8xf32>
    %95 = vector.shape_cast %94 : vector<8xf32> to vector<8x1xf32>
    %96 = vector.broadcast %95 : vector<8x1xf32> to vector<8x8xf32>
    %97 = arith.subf %93, %96 : vector<8x8xf32>
    %98 = math.exp %97 : vector<8x8xf32>
    %cst_33 = arith.constant dense<0.000000e+00> : vector<8xf32>
    %99 = vector.multi_reduction <add>, %98, %cst_33 [1] : vector<8x8xf32> to vector<8xf32>
    %100 = vector.shape_cast %99 : vector<8xf32> to vector<8x1xf32>
    %101 = vector.broadcast %100 : vector<8x1xf32> to vector<8x8xf32>
    %102 = arith.divf %98, %101 : vector<8x8xf32>
    %103 = arith.truncf %102 : vector<8x8xf32> to vector<8x8xbf16>
    %104 = arith.truncf %86 : vector<8x8xf32> to vector<8x8xbf16>
    %cst_34 = arith.constant dense<0.000000e+00> : vector<8x8xf32>
    %105 = tpu.matmul %103, %104, %cst_34 {dimension_numbers = #tpu.dot_dimension_numbers<[1], [0], [0], [1], [0, 0, 1, 1], [], []>} : vector<8x8xbf16>, vector<8x8xbf16>, vector<8x8xf32> -> vector<8x8xf32>
    %106 = vector.extract_strided_slice %37 {offsets = [0, 24], sizes = [8, 8], strides = [1, 1]} : vector<8x32xf32> to vector<8x8xf32>
    %107 = vector.extract_strided_slice %38 {offsets = [0, 24], sizes = [8, 8], strides = [1, 1]} : vector<8x32xf32> to vector<8x8xf32>
    %108 = vector.extract_strided_slice %39 {offsets = [0, 24], sizes = [8, 8], strides = [1, 1]} : vector<8x32xf32> to vector<8x8xf32>
    %109 = arith.truncf %106 : vector<8x8xf32> to vector<8x8xbf16>
    %110 = arith.truncf %107 : vector<8x8xf32> to vector<8x8xbf16>
    %cst_35 = arith.constant dense<0.000000e+00> : vector<8x8xf32>
    %111 = tpu.matmul %109, %110, %cst_35 {dimension_numbers = #tpu.dot_dimension_numbers<[1], [1], [0], [0], [0, 0, 1, 0], [], []>} : vector<8x8xbf16>, vector<8x8xbf16>, vector<8x8xf32> -> vector<8x8xf32>
    %cst_36 = arith.constant 0.353553385 : f32
    %112 = vector.broadcast %cst_36 : f32 to vector<8x8xf32>
    %113 = arith.mulf %111, %112 : vector<8x8xf32>
    %114 = vector.broadcast %27 : vector<1x8xf32> to vector<8x8xf32>
    %115 = arith.addf %113, %114 : vector<8x8xf32>
    %cst_37 = arith.constant dense<0xFF800000> : vector<8xf32>
    %116 = vector.multi_reduction <maximumf>, %115, %cst_37 [1] : vector<8x8xf32> to vector<8xf32>
    %117 = vector.shape_cast %116 : vector<8xf32> to vector<8x1xf32>
    %118 = vector.broadcast %117 : vector<8x1xf32> to vector<8x8xf32>
    %119 = arith.subf %115, %118 : vector<8x8xf32>
    %120 = math.exp %119 : vector<8x8xf32>
    %cst_38 = arith.constant dense<0.000000e+00> : vector<8xf32>
    %121 = vector.multi_reduction <add>, %120, %cst_38 [1] : vector<8x8xf32> to vector<8xf32>
    %122 = vector.shape_cast %121 : vector<8xf32> to vector<8x1xf32>
    %123 = vector.broadcast %122 : vector<8x1xf32> to vector<8x8xf32>
    %124 = arith.divf %120, %123 : vector<8x8xf32>
    %125 = arith.truncf %124 : vector<8x8xf32> to vector<8x8xbf16>
    %126 = arith.truncf %108 : vector<8x8xf32> to vector<8x8xbf16>
    %cst_39 = arith.constant dense<0.000000e+00> : vector<8x8xf32>
    %127 = tpu.matmul %125, %126, %cst_39 {dimension_numbers = #tpu.dot_dimension_numbers<[1], [0], [0], [1], [0, 0, 1, 1], [], []>} : vector<8x8xbf16>, vector<8x8xbf16>, vector<8x8xf32> -> vector<8x8xf32>
    %128 = tpu.concatenate %61, %83, %105, %127 in 1 : vector<8x8xf32>, vector<8x8xf32>, vector<8x8xf32>, vector<8x8xf32> -> vector<8x32xf32>
    %c0_40 = arith.constant 0 : index
    %c0_41 = arith.constant 0 : index
    %c0_42 = arith.constant 0 : index
    %129 = vector.load %arg7[%c0_40, %c0_41, %c0_42] : memref<2x32x32xf32, #tpu.memory_space<vmem>>, vector<1x32x32xf32>
    %130 = vector.shape_cast %129 : vector<1x32x32xf32> to vector<32x32xf32>
    %131 = arith.truncf %128 : vector<8x32xf32> to vector<8x32xbf16>
    %132 = arith.truncf %130 : vector<32x32xf32> to vector<32x32xbf16>
    %cst_43 = arith.constant dense<0.000000e+00> : vector<8x32xf32>
    %133 = tpu.matmul %131, %132, %cst_43 {dimension_numbers = #tpu.dot_dimension_numbers<[1], [0], [0], [1], [0, 0, 1, 1], [], []>} : vector<8x32xbf16>, vector<32x32xbf16>, vector<8x32xf32> -> vector<8x32xf32>
    %c0_44 = arith.constant 0 : index
    %c0_45 = arith.constant 0 : index
    %c0_46 = arith.constant 0 : index
    %134 = vector.load %arg8[%c0_44, %c0_45, %c0_46] : memref<2x1x32xf32, #tpu.memory_space<vmem>>, vector<1x1x32xf32>
    %135 = vector.shape_cast %134 : vector<1x1x32xf32> to vector<1x32xf32>
    %136 = vector.broadcast %135 : vector<1x32xf32> to vector<8x32xf32>
    %137 = arith.addf %133, %136 : vector<8x32xf32>
    %138 = arith.addf %137, %25 : vector<8x32xf32>
    %c0_47 = arith.constant 0 : index
    %c0_48 = arith.constant 0 : index
    %c0_49 = arith.constant 0 : index
    %139 = vector.load %arg9[%c0_47, %c0_48, %c0_49] : memref<2x1x32xf32, #tpu.memory_space<vmem>>, vector<1x1x32xf32>
    %140 = vector.shape_cast %139 : vector<1x1x32xf32> to vector<1x32xf32>
    %c0_50 = arith.constant 0 : index
    %c0_51 = arith.constant 0 : index
    %c0_52 = arith.constant 0 : index
    %141 = vector.load %arg10[%c0_50, %c0_51, %c0_52] : memref<2x1x32xf32, #tpu.memory_space<vmem>>, vector<1x1x32xf32>
    %142 = vector.shape_cast %141 : vector<1x1x32xf32> to vector<1x32xf32>
    %cst_53 = arith.constant dense<0.000000e+00> : vector<8xf32>
    %143 = vector.multi_reduction <add>, %138, %cst_53 [1] : vector<8x32xf32> to vector<8xf32>
    %144 = vector.shape_cast %143 : vector<8xf32> to vector<8x1xf32>
    %cst_54 = arith.constant 3.200000e+01 : f32
    %145 = vector.broadcast %cst_54 : f32 to vector<8x1xf32>
    %146 = arith.divf %144, %145 : vector<8x1xf32>
    %147 = vector.broadcast %146 : vector<8x1xf32> to vector<8x32xf32>
    %148 = arith.subf %138, %147 : vector<8x32xf32>
    %149 = arith.mulf %148, %148 : vector<8x32xf32>
    %cst_55 = arith.constant dense<0.000000e+00> : vector<8xf32>
    %150 = vector.multi_reduction <add>, %149, %cst_55 [1] : vector<8x32xf32> to vector<8xf32>
    %151 = vector.shape_cast %150 : vector<8xf32> to vector<8x1xf32>
    %cst_56 = arith.constant 3.200000e+01 : f32
    %152 = vector.broadcast %cst_56 : f32 to vector<8x1xf32>
    %153 = arith.divf %151, %152 : vector<8x1xf32>
    %154 = vector.broadcast %146 : vector<8x1xf32> to vector<8x32xf32>
    %155 = arith.subf %138, %154 : vector<8x32xf32>
    %cst_57 = arith.constant 9.99999996E-13 : f32
    %156 = vector.broadcast %cst_57 : f32 to vector<8x1xf32>
    %157 = arith.addf %153, %156 : vector<8x1xf32>
    %158 = math.rsqrt %157 : vector<8x1xf32>
    %159 = vector.broadcast %158 : vector<8x1xf32> to vector<8x32xf32>
    %160 = arith.mulf %155, %159 : vector<8x32xf32>
    %161 = vector.broadcast %140 : vector<1x32xf32> to vector<8x32xf32>
    %162 = arith.mulf %160, %161 : vector<8x32xf32>
    %163 = vector.broadcast %142 : vector<1x32xf32> to vector<8x32xf32>
    %164 = arith.addf %162, %163 : vector<8x32xf32>
    %c0_58 = arith.constant 0 : index
    %c0_59 = arith.constant 0 : index
    %c0_60 = arith.constant 0 : index
    %165 = vector.load %arg11[%c0_58, %c0_59, %c0_60] : memref<2x32x64xf32, #tpu.memory_space<vmem>>, vector<1x32x64xf32>
    %166 = vector.shape_cast %165 : vector<1x32x64xf32> to vector<32x64xf32>
    %167 = arith.truncf %164 : vector<8x32xf32> to vector<8x32xbf16>
    %168 = arith.truncf %166 : vector<32x64xf32> to vector<32x64xbf16>
    %cst_61 = arith.constant dense<0.000000e+00> : vector<8x64xf32>
    %169 = tpu.matmul %167, %168, %cst_61 {dimension_numbers = #tpu.dot_dimension_numbers<[1], [0], [0], [1], [0, 0, 1, 1], [], []>} : vector<8x32xbf16>, vector<32x64xbf16>, vector<8x64xf32> -> vector<8x64xf32>
    %c0_62 = arith.constant 0 : index
    %c0_63 = arith.constant 0 : index
    %c0_64 = arith.constant 0 : index
    %170 = vector.load %arg12[%c0_62, %c0_63, %c0_64] : memref<2x1x64xf32, #tpu.memory_space<vmem>>, vector<1x1x64xf32>
    %171 = vector.shape_cast %170 : vector<1x1x64xf32> to vector<1x64xf32>
    %172 = vector.broadcast %171 : vector<1x64xf32> to vector<8x64xf32>
    %173 = arith.addf %169, %172 : vector<8x64xf32>
    %cst_65 = arith.constant 5.000000e-01 : f32
    %174 = vector.broadcast %cst_65 : f32 to vector<8x64xf32>
    %175 = arith.mulf %174, %173 : vector<8x64xf32>
    %cst_66 = arith.constant 0.707106769 : f32
    %176 = vector.broadcast %cst_66 : f32 to vector<8x64xf32>
    %177 = arith.mulf %173, %176 : vector<8x64xf32>
    %178 = math.erf %177 : vector<8x64xf32>
    %cst_67 = arith.constant 1.000000e+00 : f32
    %179 = vector.broadcast %cst_67 : f32 to vector<8x64xf32>
    %180 = arith.addf %179, %178 : vector<8x64xf32>
    %181 = arith.mulf %175, %180 : vector<8x64xf32>
    %c0_68 = arith.constant 0 : index
    %c0_69 = arith.constant 0 : index
    %c0_70 = arith.constant 0 : index
    %182 = vector.load %arg13[%c0_68, %c0_69, %c0_70] : memref<2x64x32xf32, #tpu.memory_space<vmem>>, vector<1x64x32xf32>
    %183 = vector.shape_cast %182 : vector<1x64x32xf32> to vector<64x32xf32>
    %184 = arith.truncf %181 : vector<8x64xf32> to vector<8x64xbf16>
    %185 = arith.truncf %183 : vector<64x32xf32> to vector<64x32xbf16>
    %cst_71 = arith.constant dense<0.000000e+00> : vector<8x32xf32>
    %186 = tpu.matmul %184, %185, %cst_71 {dimension_numbers = #tpu.dot_dimension_numbers<[1], [0], [0], [1], [0, 0, 1, 1], [], []>} : vector<8x64xbf16>, vector<64x32xbf16>, vector<8x32xf32> -> vector<8x32xf32>
    %c0_72 = arith.constant 0 : index
    %c0_73 = arith.constant 0 : index
    %c0_74 = arith.constant 0 : index
    %187 = vector.load %arg14[%c0_72, %c0_73, %c0_74] : memref<2x1x32xf32, #tpu.memory_space<vmem>>, vector<1x1x32xf32>
    %188 = vector.shape_cast %187 : vector<1x1x32xf32> to vector<1x32xf32>
    %189 = vector.broadcast %188 : vector<1x32xf32> to vector<8x32xf32>
    %190 = arith.addf %186, %189 : vector<8x32xf32>
    %191 = arith.addf %190, %164 : vector<8x32xf32>
    %c0_75 = arith.constant 0 : index
    %c0_76 = arith.constant 0 : index
    %c0_77 = arith.constant 0 : index
    %192 = vector.load %arg15[%c0_75, %c0_76, %c0_77] : memref<2x1x32xf32, #tpu.memory_space<vmem>>, vector<1x1x32xf32>
    %193 = vector.shape_cast %192 : vector<1x1x32xf32> to vector<1x32xf32>
    %c0_78 = arith.constant 0 : index
    %c0_79 = arith.constant 0 : index
    %c0_80 = arith.constant 0 : index
    %194 = vector.load %arg16[%c0_78, %c0_79, %c0_80] : memref<2x1x32xf32, #tpu.memory_space<vmem>>, vector<1x1x32xf32>
    %195 = vector.shape_cast %194 : vector<1x1x32xf32> to vector<1x32xf32>
    %cst_81 = arith.constant dense<0.000000e+00> : vector<8xf32>
    %196 = vector.multi_reduction <add>, %191, %cst_81 [1] : vector<8x32xf32> to vector<8xf32>
    %197 = vector.shape_cast %196 : vector<8xf32> to vector<8x1xf32>
    %cst_82 = arith.constant 3.200000e+01 : f32
    %198 = vector.broadcast %cst_82 : f32 to vector<8x1xf32>
    %199 = arith.divf %197, %198 : vector<8x1xf32>
    %200 = vector.broadcast %199 : vector<8x1xf32> to vector<8x32xf32>
    %201 = arith.subf %191, %200 : vector<8x32xf32>
    %202 = arith.mulf %201, %201 : vector<8x32xf32>
    %cst_83 = arith.constant dense<0.000000e+00> : vector<8xf32>
    %203 = vector.multi_reduction <add>, %202, %cst_83 [1] : vector<8x32xf32> to vector<8xf32>
    %204 = vector.shape_cast %203 : vector<8xf32> to vector<8x1xf32>
    %cst_84 = arith.constant 3.200000e+01 : f32
    %205 = vector.broadcast %cst_84 : f32 to vector<8x1xf32>
    %206 = arith.divf %204, %205 : vector<8x1xf32>
    %207 = vector.broadcast %199 : vector<8x1xf32> to vector<8x32xf32>
    %208 = arith.subf %191, %207 : vector<8x32xf32>
    %cst_85 = arith.constant 9.99999996E-13 : f32
    %209 = vector.broadcast %cst_85 : f32 to vector<8x1xf32>
    %210 = arith.addf %206, %209 : vector<8x1xf32>
    %211 = math.rsqrt %210 : vector<8x1xf32>
    %212 = vector.broadcast %211 : vector<8x1xf32> to vector<8x32xf32>
    %213 = arith.mulf %208, %212 : vector<8x32xf32>
    %214 = vector.broadcast %193 : vector<1x32xf32> to vector<8x32xf32>
    %215 = arith.mulf %213, %214 : vector<8x32xf32>
    %216 = vector.broadcast %195 : vector<1x32xf32> to vector<8x32xf32>
    %217 = arith.addf %215, %216 : vector<8x32xf32>
    %c1 = arith.constant 1 : index
    %c0_86 = arith.constant 0 : index
    %c0_87 = arith.constant 0 : index
    %218 = vector.load %arg5[%c1, %c0_86, %c0_87] : memref<2x32x96xf32, #tpu.memory_space<vmem>>, vector<1x32x96xf32>
    %219 = vector.shape_cast %218 : vector<1x32x96xf32> to vector<32x96xf32>
    %220 = arith.truncf %217 : vector<8x32xf32> to vector<8x32xbf16>
    %221 = arith.truncf %219 : vector<32x96xf32> to vector<32x96xbf16>
    %cst_88 = arith.constant dense<0.000000e+00> : vector<8x96xf32>
    %222 = tpu.matmul %220, %221, %cst_88 {dimension_numbers = #tpu.dot_dimension_numbers<[1], [0], [0], [1], [0, 0, 1, 1], [], []>} : vector<8x32xbf16>, vector<32x96xbf16>, vector<8x96xf32> -> vector<8x96xf32>
    %c1_89 = arith.constant 1 : index
    %c0_90 = arith.constant 0 : index
    %c0_91 = arith.constant 0 : index
    %223 = vector.load %arg6[%c1_89, %c0_90, %c0_91] : memref<2x1x96xf32, #tpu.memory_space<vmem>>, vector<1x1x96xf32>
    %224 = vector.shape_cast %223 : vector<1x1x96xf32> to vector<1x96xf32>
    %225 = vector.broadcast %224 : vector<1x96xf32> to vector<8x96xf32>
    %226 = arith.addf %222, %225 : vector<8x96xf32>
    %227 = vector.extract_strided_slice %226 {offsets = [0, 0], sizes = [8, 32], strides = [1, 1]} : vector<8x96xf32> to vector<8x32xf32>
    %228 = vector.extract_strided_slice %226 {offsets = [0, 32], sizes = [8, 32], strides = [1, 1]} : vector<8x96xf32> to vector<8x32xf32>
    %229 = vector.extract_strided_slice %226 {offsets = [0, 64], sizes = [8, 32], strides = [1, 1]} : vector<8x96xf32> to vector<8x32xf32>
    %230 = vector.extract_strided_slice %227 {offsets = [0, 0], sizes = [8, 8], strides = [1, 1]} : vector<8x32xf32> to vector<8x8xf32>
    %231 = vector.extract_strided_slice %228 {offsets = [0, 0], sizes = [8, 8], strides = [1, 1]} : vector<8x32xf32> to vector<8x8xf32>
    %232 = vector.extract_strided_slice %229 {offsets = [0, 0], sizes = [8, 8], strides = [1, 1]} : vector<8x32xf32> to vector<8x8xf32>
    %233 = arith.truncf %230 : vector<8x8xf32> to vector<8x8xbf16>
    %234 = arith.truncf %231 : vector<8x8xf32> to vector<8x8xbf16>
    %cst_92 = arith.constant dense<0.000000e+00> : vector<8x8xf32>
    %235 = tpu.matmul %233, %234, %cst_92 {dimension_numbers = #tpu.dot_dimension_numbers<[1], [1], [0], [0], [0, 0, 1, 0], [], []>} : vector<8x8xbf16>, vector<8x8xbf16>, vector<8x8xf32> -> vector<8x8xf32>
    %cst_93 = arith.constant 0.353553385 : f32
    %236 = vector.broadcast %cst_93 : f32 to vector<8x8xf32>
    %237 = arith.mulf %235, %236 : vector<8x8xf32>
    %238 = vector.broadcast %27 : vector<1x8xf32> to vector<8x8xf32>
    %239 = arith.addf %237, %238 : vector<8x8xf32>
    %cst_94 = arith.constant dense<0xFF800000> : vector<8xf32>
    %240 = vector.multi_reduction <maximumf>, %239, %cst_94 [1] : vector<8x8xf32> to vector<8xf32>
    %241 = vector.shape_cast %240 : vector<8xf32> to vector<8x1xf32>
    %242 = vector.broadcast %241 : vector<8x1xf32> to vector<8x8xf32>
    %243 = arith.subf %239, %242 : vector<8x8xf32>
    %244 = math.exp %243 : vector<8x8xf32>
    %cst_95 = arith.constant dense<0.000000e+00> : vector<8xf32>
    %245 = vector.multi_reduction <add>, %244, %cst_95 [1] : vector<8x8xf32> to vector<8xf32>
    %246 = vector.shape_cast %245 : vector<8xf32> to vector<8x1xf32>
    %247 = vector.broadcast %246 : vector<8x1xf32> to vector<8x8xf32>
    %248 = arith.divf %244, %247 : vector<8x8xf32>
    %249 = arith.truncf %248 : vector<8x8xf32> to vector<8x8xbf16>
    %250 = arith.truncf %232 : vector<8x8xf32> to vector<8x8xbf16>
    %cst_96 = arith.constant dense<0.000000e+00> : vector<8x8xf32>
    %251 = tpu.matmul %249, %250, %cst_96 {dimension_numbers = #tpu.dot_dimension_numbers<[1], [0], [0], [1], [0, 0, 1, 1], [], []>} : vector<8x8xbf16>, vector<8x8xbf16>, vector<8x8xf32> -> vector<8x8xf32>
    %252 = vector.extract_strided_slice %227 {offsets = [0, 8], sizes = [8, 8], strides = [1, 1]} : vector<8x32xf32> to vector<8x8xf32>
    %253 = vector.extract_strided_slice %228 {offsets = [0, 8], sizes = [8, 8], strides = [1, 1]} : vector<8x32xf32> to vector<8x8xf32>
    %254 = vector.extract_strided_slice %229 {offsets = [0, 8], sizes = [8, 8], strides = [1, 1]} : vector<8x32xf32> to vector<8x8xf32>
    %255 = arith.truncf %252 : vector<8x8xf32> to vector<8x8xbf16>
    %256 = arith.truncf %253 : vector<8x8xf32> to vector<8x8xbf16>
    %cst_97 = arith.constant dense<0.000000e+00> : vector<8x8xf32>
    %257 = tpu.matmul %255, %256, %cst_97 {dimension_numbers = #tpu.dot_dimension_numbers<[1], [1], [0], [0], [0, 0, 1, 0], [], []>} : vector<8x8xbf16>, vector<8x8xbf16>, vector<8x8xf32> -> vector<8x8xf32>
    %cst_98 = arith.constant 0.353553385 : f32
    %258 = vector.broadcast %cst_98 : f32 to vector<8x8xf32>
    %259 = arith.mulf %257, %258 : vector<8x8xf32>
    %260 = vector.broadcast %27 : vector<1x8xf32> to vector<8x8xf32>
    %261 = arith.addf %259, %260 : vector<8x8xf32>
    %cst_99 = arith.constant dense<0xFF800000> : vector<8xf32>
    %262 = vector.multi_reduction <maximumf>, %261, %cst_99 [1] : vector<8x8xf32> to vector<8xf32>
    %263 = vector.shape_cast %262 : vector<8xf32> to vector<8x1xf32>
    %264 = vector.broadcast %263 : vector<8x1xf32> to vector<8x8xf32>
    %265 = arith.subf %261, %264 : vector<8x8xf32>
    %266 = math.exp %265 : vector<8x8xf32>
    %cst_100 = arith.constant dense<0.000000e+00> : vector<8xf32>
    %267 = vector.multi_reduction <add>, %266, %cst_100 [1] : vector<8x8xf32> to vector<8xf32>
    %268 = vector.shape_cast %267 : vector<8xf32> to vector<8x1xf32>
    %269 = vector.broadcast %268 : vector<8x1xf32> to vector<8x8xf32>
    %270 = arith.divf %266, %269 : vector<8x8xf32>
    %271 = arith.truncf %270 : vector<8x8xf32> to vector<8x8xbf16>
    %272 = arith.truncf %254 : vector<8x8xf32> to vector<8x8xbf16>
    %cst_101 = arith.constant dense<0.000000e+00> : vector<8x8xf32>
    %273 = tpu.matmul %271, %272, %cst_101 {dimension_numbers = #tpu.dot_dimension_numbers<[1], [0], [0], [1], [0, 0, 1, 1], [], []>} : vector<8x8xbf16>, vector<8x8xbf16>, vector<8x8xf32> -> vector<8x8xf32>
    %274 = vector.extract_strided_slice %227 {offsets = [0, 16], sizes = [8, 8], strides = [1, 1]} : vector<8x32xf32> to vector<8x8xf32>
    %275 = vector.extract_strided_slice %228 {offsets = [0, 16], sizes = [8, 8], strides = [1, 1]} : vector<8x32xf32> to vector<8x8xf32>
    %276 = vector.extract_strided_slice %229 {offsets = [0, 16], sizes = [8, 8], strides = [1, 1]} : vector<8x32xf32> to vector<8x8xf32>
    %277 = arith.truncf %274 : vector<8x8xf32> to vector<8x8xbf16>
    %278 = arith.truncf %275 : vector<8x8xf32> to vector<8x8xbf16>
    %cst_102 = arith.constant dense<0.000000e+00> : vector<8x8xf32>
    %279 = tpu.matmul %277, %278, %cst_102 {dimension_numbers = #tpu.dot_dimension_numbers<[1], [1], [0], [0], [0, 0, 1, 0], [], []>} : vector<8x8xbf16>, vector<8x8xbf16>, vector<8x8xf32> -> vector<8x8xf32>
    %cst_103 = arith.constant 0.353553385 : f32
    %280 = vector.broadcast %cst_103 : f32 to vector<8x8xf32>
    %281 = arith.mulf %279, %280 : vector<8x8xf32>
    %282 = vector.broadcast %27 : vector<1x8xf32> to vector<8x8xf32>
    %283 = arith.addf %281, %282 : vector<8x8xf32>
    %cst_104 = arith.constant dense<0xFF800000> : vector<8xf32>
    %284 = vector.multi_reduction <maximumf>, %283, %cst_104 [1] : vector<8x8xf32> to vector<8xf32>
    %285 = vector.shape_cast %284 : vector<8xf32> to vector<8x1xf32>
    %286 = vector.broadcast %285 : vector<8x1xf32> to vector<8x8xf32>
    %287 = arith.subf %283, %286 : vector<8x8xf32>
    %288 = math.exp %287 : vector<8x8xf32>
    %cst_105 = arith.constant dense<0.000000e+00> : vector<8xf32>
    %289 = vector.multi_reduction <add>, %288, %cst_105 [1] : vector<8x8xf32> to vector<8xf32>
    %290 = vector.shape_cast %289 : vector<8xf32> to vector<8x1xf32>
    %291 = vector.broadcast %290 : vector<8x1xf32> to vector<8x8xf32>
    %292 = arith.divf %288, %291 : vector<8x8xf32>
    %293 = arith.truncf %292 : vector<8x8xf32> to vector<8x8xbf16>
    %294 = arith.truncf %276 : vector<8x8xf32> to vector<8x8xbf16>
    %cst_106 = arith.constant dense<0.000000e+00> : vector<8x8xf32>
    %295 = tpu.matmul %293, %294, %cst_106 {dimension_numbers = #tpu.dot_dimension_numbers<[1], [0], [0], [1], [0, 0, 1, 1], [], []>} : vector<8x8xbf16>, vector<8x8xbf16>, vector<8x8xf32> -> vector<8x8xf32>
    %296 = vector.extract_strided_slice %227 {offsets = [0, 24], sizes = [8, 8], strides = [1, 1]} : vector<8x32xf32> to vector<8x8xf32>
    %297 = vector.extract_strided_slice %228 {offsets = [0, 24], sizes = [8, 8], strides = [1, 1]} : vector<8x32xf32> to vector<8x8xf32>
    %298 = vector.extract_strided_slice %229 {offsets = [0, 24], sizes = [8, 8], strides = [1, 1]} : vector<8x32xf32> to vector<8x8xf32>
    %299 = arith.truncf %296 : vector<8x8xf32> to vector<8x8xbf16>
    %300 = arith.truncf %297 : vector<8x8xf32> to vector<8x8xbf16>
    %cst_107 = arith.constant dense<0.000000e+00> : vector<8x8xf32>
    %301 = tpu.matmul %299, %300, %cst_107 {dimension_numbers = #tpu.dot_dimension_numbers<[1], [1], [0], [0], [0, 0, 1, 0], [], []>} : vector<8x8xbf16>, vector<8x8xbf16>, vector<8x8xf32> -> vector<8x8xf32>
    %cst_108 = arith.constant 0.353553385 : f32
    %302 = vector.broadcast %cst_108 : f32 to vector<8x8xf32>
    %303 = arith.mulf %301, %302 : vector<8x8xf32>
    %304 = vector.broadcast %27 : vector<1x8xf32> to vector<8x8xf32>
    %305 = arith.addf %303, %304 : vector<8x8xf32>
    %cst_109 = arith.constant dense<0xFF800000> : vector<8xf32>
    %306 = vector.multi_reduction <maximumf>, %305, %cst_109 [1] : vector<8x8xf32> to vector<8xf32>
    %307 = vector.shape_cast %306 : vector<8xf32> to vector<8x1xf32>
    %308 = vector.broadcast %307 : vector<8x1xf32> to vector<8x8xf32>
    %309 = arith.subf %305, %308 : vector<8x8xf32>
    %310 = math.exp %309 : vector<8x8xf32>
    %cst_110 = arith.constant dense<0.000000e+00> : vector<8xf32>
    %311 = vector.multi_reduction <add>, %310, %cst_110 [1] : vector<8x8xf32> to vector<8xf32>
    %312 = vector.shape_cast %311 : vector<8xf32> to vector<8x1xf32>
    %313 = vector.broadcast %312 : vector<8x1xf32> to vector<8x8xf32>
    %314 = arith.divf %310, %313 : vector<8x8xf32>
    %315 = arith.truncf %314 : vector<8x8xf32> to vector<8x8xbf16>
    %316 = arith.truncf %298 : vector<8x8xf32> to vector<8x8xbf16>
    %cst_111 = arith.constant dense<0.000000e+00> : vector<8x8xf32>
    %317 = tpu.matmul %315, %316, %cst_111 {dimension_numbers = #tpu.dot_dimension_numbers<[1], [0], [0], [1], [0, 0, 1, 1], [], []>} : vector<8x8xbf16>, vector<8x8xbf16>, vector<8x8xf32> -> vector<8x8xf32>
    %318 = tpu.concatenate %251, %273, %295, %317 in 1 : vector<8x8xf32>, vector<8x8xf32>, vector<8x8xf32>, vector<8x8xf32> -> vector<8x32xf32>
    %c1_112 = arith.constant 1 : index
    %c0_113 = arith.constant 0 : index
    %c0_114 = arith.constant 0 : index
    %319 = vector.load %arg7[%c1_112, %c0_113, %c0_114] : memref<2x32x32xf32, #tpu.memory_space<vmem>>, vector<1x32x32xf32>
    %320 = vector.shape_cast %319 : vector<1x32x32xf32> to vector<32x32xf32>
    %321 = arith.truncf %318 : vector<8x32xf32> to vector<8x32xbf16>
    %322 = arith.truncf %320 : vector<32x32xf32> to vector<32x32xbf16>
    %cst_115 = arith.constant dense<0.000000e+00> : vector<8x32xf32>
    %323 = tpu.matmul %321, %322, %cst_115 {dimension_numbers = #tpu.dot_dimension_numbers<[1], [0], [0], [1], [0, 0, 1, 1], [], []>} : vector<8x32xbf16>, vector<32x32xbf16>, vector<8x32xf32> -> vector<8x32xf32>
    %c1_116 = arith.constant 1 : index
    %c0_117 = arith.constant 0 : index
    %c0_118 = arith.constant 0 : index
    %324 = vector.load %arg8[%c1_116, %c0_117, %c0_118] : memref<2x1x32xf32, #tpu.memory_space<vmem>>, vector<1x1x32xf32>
    %325 = vector.shape_cast %324 : vector<1x1x32xf32> to vector<1x32xf32>
    %326 = vector.broadcast %325 : vector<1x32xf32> to vector<8x32xf32>
    %327 = arith.addf %323, %326 : vector<8x32xf32>
    %328 = arith.addf %327, %217 : vector<8x32xf32>
    %c1_119 = arith.constant 1 : index
    %c0_120 = arith.constant 0 : index
    %c0_121 = arith.constant 0 : index
    %329 = vector.load %arg9[%c1_119, %c0_120, %c0_121] : memref<2x1x32xf32, #tpu.memory_space<vmem>>, vector<1x1x32xf32>
    %330 = vector.shape_cast %329 : vector<1x1x32xf32> to vector<1x32xf32>
    %c1_122 = arith.constant 1 : index
    %c0_123 = arith.constant 0 : index
    %c0_124 = arith.constant 0 : index
    %331 = vector.load %arg10[%c1_122, %c0_123, %c0_124] : memref<2x1x32xf32, #tpu.memory_space<vmem>>, vector<1x1x32xf32>
    %332 = vector.shape_cast %331 : vector<1x1x32xf32> to vector<1x32xf32>
    %cst_125 = arith.constant dense<0.000000e+00> : vector<8xf32>
    %333 = vector.multi_reduction <add>, %328, %cst_125 [1] : vector<8x32xf32> to vector<8xf32>
    %334 = vector.shape_cast %333 : vector<8xf32> to vector<8x1xf32>
    %cst_126 = arith.constant 3.200000e+01 : f32
    %335 = vector.broadcast %cst_126 : f32 to vector<8x1xf32>
    %336 = arith.divf %334, %335 : vector<8x1xf32>
    %337 = vector.broadcast %336 : vector<8x1xf32> to vector<8x32xf32>
    %338 = arith.subf %328, %337 : vector<8x32xf32>
    %339 = arith.mulf %338, %338 : vector<8x32xf32>
    %cst_127 = arith.constant dense<0.000000e+00> : vector<8xf32>
    %340 = vector.multi_reduction <add>, %339, %cst_127 [1] : vector<8x32xf32> to vector<8xf32>
    %341 = vector.shape_cast %340 : vector<8xf32> to vector<8x1xf32>
    %cst_128 = arith.constant 3.200000e+01 : f32
    %342 = vector.broadcast %cst_128 : f32 to vector<8x1xf32>
    %343 = arith.divf %341, %342 : vector<8x1xf32>
    %344 = vector.broadcast %336 : vector<8x1xf32> to vector<8x32xf32>
    %345 = arith.subf %328, %344 : vector<8x32xf32>
    %cst_129 = arith.constant 9.99999996E-13 : f32
    %346 = vector.broadcast %cst_129 : f32 to vector<8x1xf32>
    %347 = arith.addf %343, %346 : vector<8x1xf32>
    %348 = math.rsqrt %347 : vector<8x1xf32>
    %349 = vector.broadcast %348 : vector<8x1xf32> to vector<8x32xf32>
    %350 = arith.mulf %345, %349 : vector<8x32xf32>
    %351 = vector.broadcast %330 : vector<1x32xf32> to vector<8x32xf32>
    %352 = arith.mulf %350, %351 : vector<8x32xf32>
    %353 = vector.broadcast %332 : vector<1x32xf32> to vector<8x32xf32>
    %354 = arith.addf %352, %353 : vector<8x32xf32>
    %c1_130 = arith.constant 1 : index
    %c0_131 = arith.constant 0 : index
    %c0_132 = arith.constant 0 : index
    %355 = vector.load %arg11[%c1_130, %c0_131, %c0_132] : memref<2x32x64xf32, #tpu.memory_space<vmem>>, vector<1x32x64xf32>
    %356 = vector.shape_cast %355 : vector<1x32x64xf32> to vector<32x64xf32>
    %357 = arith.truncf %354 : vector<8x32xf32> to vector<8x32xbf16>
    %358 = arith.truncf %356 : vector<32x64xf32> to vector<32x64xbf16>
    %cst_133 = arith.constant dense<0.000000e+00> : vector<8x64xf32>
    %359 = tpu.matmul %357, %358, %cst_133 {dimension_numbers = #tpu.dot_dimension_numbers<[1], [0], [0], [1], [0, 0, 1, 1], [], []>} : vector<8x32xbf16>, vector<32x64xbf16>, vector<8x64xf32> -> vector<8x64xf32>
    %c1_134 = arith.constant 1 : index
    %c0_135 = arith.constant 0 : index
    %c0_136 = arith.constant 0 : index
    %360 = vector.load %arg12[%c1_134, %c0_135, %c0_136] : memref<2x1x64xf32, #tpu.memory_space<vmem>>, vector<1x1x64xf32>
    %361 = vector.shape_cast %360 : vector<1x1x64xf32> to vector<1x64xf32>
    %362 = vector.broadcast %361 : vector<1x64xf32> to vector<8x64xf32>
    %363 = arith.addf %359, %362 : vector<8x64xf32>
    %cst_137 = arith.constant 5.000000e-01 : f32
    %364 = vector.broadcast %cst_137 : f32 to vector<8x64xf32>
    %365 = arith.mulf %364, %363 : vector<8x64xf32>
    %cst_138 = arith.constant 0.707106769 : f32
    %366 = vector.broadcast %cst_138 : f32 to vector<8x64xf32>
    %367 = arith.mulf %363, %366 : vector<8x64xf32>
    %368 = math.erf %367 : vector<8x64xf32>
    %cst_139 = arith.constant 1.000000e+00 : f32
    %369 = vector.broadcast %cst_139 : f32 to vector<8x64xf32>
    %370 = arith.addf %369, %368 : vector<8x64xf32>
    %371 = arith.mulf %365, %370 : vector<8x64xf32>
    %c1_140 = arith.constant 1 : index
    %c0_141 = arith.constant 0 : index
    %c0_142 = arith.constant 0 : index
    %372 = vector.load %arg13[%c1_140, %c0_141, %c0_142] : memref<2x64x32xf32, #tpu.memory_space<vmem>>, vector<1x64x32xf32>
    %373 = vector.shape_cast %372 : vector<1x64x32xf32> to vector<64x32xf32>
    %374 = arith.truncf %371 : vector<8x64xf32> to vector<8x64xbf16>
    %375 = arith.truncf %373 : vector<64x32xf32> to vector<64x32xbf16>
    %cst_143 = arith.constant dense<0.000000e+00> : vector<8x32xf32>
    %376 = tpu.matmul %374, %375, %cst_143 {dimension_numbers = #tpu.dot_dimension_numbers<[1], [0], [0], [1], [0, 0, 1, 1], [], []>} : vector<8x64xbf16>, vector<64x32xbf16>, vector<8x32xf32> -> vector<8x32xf32>
    %c1_144 = arith.constant 1 : index
    %c0_145 = arith.constant 0 : index
    %c0_146 = arith.constant 0 : index
    %377 = vector.load %arg14[%c1_144, %c0_145, %c0_146] : memref<2x1x32xf32, #tpu.memory_space<vmem>>, vector<1x1x32xf32>
    %378 = vector.shape_cast %377 : vector<1x1x32xf32> to vector<1x32xf32>
    %379 = vector.broadcast %378 : vector<1x32xf32> to vector<8x32xf32>
    %380 = arith.addf %376, %379 : vector<8x32xf32>
    %381 = arith.addf %380, %354 : vector<8x32xf32>
    %c1_147 = arith.constant 1 : index
    %c0_148 = arith.constant 0 : index
    %c0_149 = arith.constant 0 : index
    %382 = vector.load %arg15[%c1_147, %c0_148, %c0_149] : memref<2x1x32xf32, #tpu.memory_space<vmem>>, vector<1x1x32xf32>
    %383 = vector.shape_cast %382 : vector<1x1x32xf32> to vector<1x32xf32>
    %c1_150 = arith.constant 1 : index
    %c0_151 = arith.constant 0 : index
    %c0_152 = arith.constant 0 : index
    %384 = vector.load %arg16[%c1_150, %c0_151, %c0_152] : memref<2x1x32xf32, #tpu.memory_space<vmem>>, vector<1x1x32xf32>
    %385 = vector.shape_cast %384 : vector<1x1x32xf32> to vector<1x32xf32>
    %cst_153 = arith.constant dense<0.000000e+00> : vector<8xf32>
    %386 = vector.multi_reduction <add>, %381, %cst_153 [1] : vector<8x32xf32> to vector<8xf32>
    %387 = vector.shape_cast %386 : vector<8xf32> to vector<8x1xf32>
    %cst_154 = arith.constant 3.200000e+01 : f32
    %388 = vector.broadcast %cst_154 : f32 to vector<8x1xf32>
    %389 = arith.divf %387, %388 : vector<8x1xf32>
    %390 = vector.broadcast %389 : vector<8x1xf32> to vector<8x32xf32>
    %391 = arith.subf %381, %390 : vector<8x32xf32>
    %392 = arith.mulf %391, %391 : vector<8x32xf32>
    %cst_155 = arith.constant dense<0.000000e+00> : vector<8xf32>
    %393 = vector.multi_reduction <add>, %392, %cst_155 [1] : vector<8x32xf32> to vector<8xf32>
    %394 = vector.shape_cast %393 : vector<8xf32> to vector<8x1xf32>
    %cst_156 = arith.constant 3.200000e+01 : f32
    %395 = vector.broadcast %cst_156 : f32 to vector<8x1xf32>
    %396 = arith.divf %394, %395 : vector<8x1xf32>
    %397 = vector.broadcast %389 : vector<8x1xf32> to vector<8x32xf32>
    %398 = arith.subf %381, %397 : vector<8x32xf32>
    %cst_157 = arith.constant 9.99999996E-13 : f32
    %399 = vector.broadcast %cst_157 : f32 to vector<8x1xf32>
    %400 = arith.addf %396, %399 : vector<8x1xf32>
    %401 = math.rsqrt %400 : vector<8x1xf32>
    %402 = vector.broadcast %401 : vector<8x1xf32> to vector<8x32xf32>
    %403 = arith.mulf %398, %402 : vector<8x32xf32>
    %404 = vector.broadcast %383 : vector<1x32xf32> to vector<8x32xf32>
    %405 = arith.mulf %403, %404 : vector<8x32xf32>
    %406 = vector.broadcast %385 : vector<1x32xf32> to vector<8x32xf32>
    %407 = arith.addf %405, %406 : vector<8x32xf32>
    %408 = vector.extract_strided_slice %407 {offsets = [0, 0], sizes = [1, 32], strides = [1, 1]} : vector<8x32xf32> to vector<1x32xf32>
    %c0_158 = arith.constant 0 : index
    %c0_159 = arith.constant 0 : index
    %409 = vector.load %arg17[%c0_158, %c0_159] : memref<32x48xf32, #tpu.memory_space<vmem>>, vector<32x48xf32>
    %cst_160 = arith.constant dense<0.000000e+00> : vector<1x48xf32>
    %410 = tpu.matmul %408, %409, %cst_160 {dimension_numbers = #tpu.dot_dimension_numbers<[1], [0], [0], [1], [0, 0, 1, 1], [], []>} : vector<1x32xf32>, vector<32x48xf32>, vector<1x48xf32> -> vector<1x48xf32>
    %c0_161 = arith.constant 0 : index
    %c0_162 = arith.constant 0 : index
    %411 = vector.load %arg18[%c0_161, %c0_162] : memref<1x48xf32, #tpu.memory_space<vmem>>, vector<1x48xf32>
    %412 = arith.addf %410, %411 : vector<1x48xf32>
    %413 = vector.extract_strided_slice %412 {offsets = [0, 0], sizes = [1, 32], strides = [1, 1]} : vector<1x48xf32> to vector<1x32xf32>
    %414 = arith.mulf %413, %413 : vector<1x32xf32>
    %cst_163 = arith.constant dense<0.000000e+00> : vector<1xf32>
    %415 = vector.multi_reduction <add>, %414, %cst_163 [1] : vector<1x32xf32> to vector<1xf32>
    %416 = vector.shape_cast %415 : vector<1xf32> to vector<1x1xf32>
    %417 = math.sqrt %416 : vector<1x1xf32>
    %cst_164 = arith.constant 9.99999996E-13 : f32
    %418 = vector.broadcast %cst_164 : f32 to vector<1x1xf32>
    %419 = arith.maximumf %417, %418 : vector<1x1xf32>
    %420 = vector.broadcast %419 : vector<1x1xf32> to vector<1x32xf32>
    %421 = arith.divf %413, %420 : vector<1x32xf32>
    %422 = vector.extract_strided_slice %412 {offsets = [0, 32], sizes = [1, 16], strides = [1, 1]} : vector<1x48xf32> to vector<1x16xf32>
    %423 = arith.mulf %422, %422 : vector<1x16xf32>
    %cst_165 = arith.constant dense<0.000000e+00> : vector<1xf32>
    %424 = vector.multi_reduction <add>, %423, %cst_165 [1] : vector<1x16xf32> to vector<1xf32>
    %425 = vector.shape_cast %424 : vector<1xf32> to vector<1x1xf32>
    %426 = math.sqrt %425 : vector<1x1xf32>
    %cst_166 = arith.constant 9.99999996E-13 : f32
    %427 = vector.broadcast %cst_166 : f32 to vector<1x1xf32>
    %428 = arith.maximumf %426, %427 : vector<1x1xf32>
    %429 = vector.broadcast %428 : vector<1x1xf32> to vector<1x16xf32>
    %430 = arith.divf %422, %429 : vector<1x16xf32>
    %431 = tpu.concatenate %421, %430 in 1 : vector<1x32xf32>, vector<1x16xf32> -> vector<1x48xf32>
    %c0_167 = arith.constant 0 : index
    %c0_168 = arith.constant 0 : index
    %c0_169 = arith.constant 0 : index
    %432 = vector.load %arg19[%c0_167, %c0_168, %c0_169] : memref<1x1x48xf32, #tpu.memory_space<vmem>>, vector<1x1x48xf32>
    %433 = vector.shape_cast %432 : vector<1x1x48xf32> to vector<1x48xf32>
    %434 = vector.shape_cast %431 : vector<1x48xf32> to vector<1x1x48xf32>
    tpu.vector_store %arg19[%c0_167, %c0_168, %c0_169], %434 {strides = array<i32>} : memref<1x1x48xf32, #tpu.memory_space<vmem>>, vector<1x1x48xf32>,
    return
  }
  func.func @transform_0(%arg0: i32) -> (i32, i32, i32) {
    %c0_i32 = arith.constant 0 : i32
    %c0_i32_0 = arith.constant 0 : i32
    %c0_i32_1 = arith.constant 0 : i32
    return %arg0, %c0_i32, %c0_i32_0 : i32, i32, i32
  }
  func.func @transform_1(%arg0: i32) -> (i32, i32, i32) {
    %c0_i32 = arith.constant 0 : i32
    %c0_i32_0 = arith.constant 0 : i32
    %c0_i32_1 = arith.constant 0 : i32
    return %arg0, %c0_i32, %c0_i32_0 : i32, i32, i32
  }
  func.func @transform_2(%arg0: i32) -> (i32, i32) {
    %c0_i32 = arith.constant 0 : i32
    %c0_i32_0 = arith.constant 0 : i32
    %c0_i32_1 = arith.constant 0 : i32
    return %c0_i32, %c0_i32_0 : i32, i32
  }
  func.func @transform_3(%arg0: i32) -> (i32, i32) {
    %c0_i32 = arith.constant 0 : i32
    %c0_i32_0 = arith.constant 0 : i32
    %c0_i32_1 = arith.constant 0 : i32
    return %c0_i32, %c0_i32_0 : i32, i32
  }
  func.func @transform_4(%arg0: i32) -> (i32, i32, i32) {
    %c0_i32 = arith.constant 0 : i32
    %c0_i32_0 = arith.constant 0 : i32
    %c0_i32_1 = arith.constant 0 : i32
    %c0_i32_2 = arith.constant 0 : i32
    return %c0_i32, %c0_i32_0, %c0_i32_1 : i32, i32, i32
  }
  func.func @transform_5(%arg0: i32) -> (i32, i32, i32) {
    %c0_i32 = arith.constant 0 : i32
    %c0_i32_0 = arith.constant 0 : i32
    %c0_i32_1 = arith.constant 0 : i32
    %c0_i32_2 = arith.constant 0 : i32
    return %c0_i32, %c0_i32_0, %c0_i32_1 : i32, i32, i32
  }
  func.func @transform_6(%arg0: i32) -> (i32, i32, i32) {
    %c0_i32 = arith.constant 0 : i32
    %c0_i32_0 = arith.constant 0 : i32
    %c0_i32_1 = arith.constant 0 : i32
    %c0_i32_2 = arith.constant 0 : i32
    return %c0_i32, %c0_i32_0, %c0_i32_1 : i32, i32, i32
  }
  func.func @transform_7(%arg0: i32) -> (i32, i32, i32) {
    %c0_i32 = arith.constant 0 : i32
    %c0_i32_0 = arith.constant 0 : i32
    %c0_i32_1 = arith.constant 0 : i32
    %c0_i32_2 = arith.constant 0 : i32
    return %c0_i32, %c0_i32_0, %c0_i32_1 : i32, i32, i32
  }
  func.func @transform_8(%arg0: i32) -> (i32, i32, i32) {
    %c0_i32 = arith.constant 0 : i32
    %c0_i32_0 = arith.constant 0 : i32
    %c0_i32_1 = arith.constant 0 : i32
    %c0_i32_2 = arith.constant 0 : i32
    return %c0_i32, %c0_i32_0, %c0_i32_1 : i32, i32, i32
  }
  func.func @transform_9(%arg0: i32) -> (i32, i32, i32) {
    %c0_i32 = arith.constant 0 : i32
    %c0_i32_0 = arith.constant 0 : i32
    %c0_i32_1 = arith.constant 0 : i32
    %c0_i32_2 = arith.constant 0 : i32
    return %c0_i32, %c0_i32_0, %c0_i32_1 : i32, i32, i32
  }
  func.func @transform_10(%arg0: i32) -> (i32, i32, i32) {
    %c0_i32 = arith.constant 0 : i32
    %c0_i32_0 = arith.constant 0 : i32
    %c0_i32_1 = arith.constant 0 : i32
    %c0_i32_2 = arith.constant 0 : i32
    return %c0_i32, %c0_i32_0, %c0_i32_1 : i32, i32, i32
  }
  func.func @transform_11(%arg0: i32) -> (i32, i32, i32) {
    %c0_i32 = arith.constant 0 : i32
    %c0_i32_0 = arith.constant 0 : i32
    %c0_i32_1 = arith.constant 0 : i32
    %c0_i32_2 = arith.constant 0 : i32
    return %c0_i32, %c0_i32_0, %c0_i32_1 : i32, i32, i32
  }
  func.func @transform_12(%arg0: i32) -> (i32, i32, i32) {
    %c0_i32 = arith.constant 0 : i32
    %c0_i32_0 = arith.constant 0 : i32
    %c0_i32_1 = arith.constant 0 : i32
    %c0_i32_2 = arith.constant 0 : i32
    return %c0_i32, %c0_i32_0, %c0_i32_1 : i32, i32, i32
  }
  func.func @transform_13(%arg0: i32) -> (i32, i32, i32) {
    %c0_i32 = arith.constant 0 : i32
    %c0_i32_0 = arith.constant 0 : i32
    %c0_i32_1 = arith.constant 0 : i32
    %c0_i32_2 = arith.constant 0 : i32
    return %c0_i32, %c0_i32_0, %c0_i32_1 : i32, i32, i32
  }
  func.func @transform_14(%arg0: i32) -> (i32, i32, i32) {
    %c0_i32 = arith.constant 0 : i32
    %c0_i32_0 = arith.constant 0 : i32
    %c0_i32_1 = arith.constant 0 : i32
    %c0_i32_2 = arith.constant 0 : i32
    return %c0_i32, %c0_i32_0, %c0_i32_1 : i32, i32, i32
  }
  func.func @transform_15(%arg0: i32) -> (i32, i32, i32) {
    %c0_i32 = arith.constant 0 : i32
    %c0_i32_0 = arith.constant 0 : i32
    %c0_i32_1 = arith.constant 0 : i32
    %c0_i32_2 = arith.constant 0 : i32
    return %c0_i32, %c0_i32_0, %c0_i32_1 : i32, i32, i32
  }
  func.func @transform_16(%arg0: i32) -> (i32, i32) {
    %c0_i32 = arith.constant 0 : i32
    %c0_i32_0 = arith.constant 0 : i32
    %c0_i32_1 = arith.constant 0 : i32
    return %c0_i32, %c0_i32_0 : i32, i32
  }
  func.func @transform_17(%arg0: i32) -> (i32, i32) {
    %c0_i32 = arith.constant 0 : i32
    %c0_i32_0 = arith.constant 0 : i32
    %c0_i32_1 = arith.constant 0 : i32
    return %c0_i32, %c0_i32_0 : i32, i32
  }
  func.func @transform_18(%arg0: i32) -> (i32, i32, i32) {
    %c0_i32 = arith.constant 0 : i32
    %c0_i32_0 = arith.constant 0 : i32
    %c0_i32_1 = arith.constant 0 : i32
    return %arg0, %c0_i32, %c0_i32_0 : i32, i32, i32
  }
}

</mosaic_0001>

<bundles_post_ra>
// kernel: bert_regression_forward.1
= control target key start
LH: loop header
LB: loop body
LE: loop exit
PB: predicated region body
PF: predicated region fallthrough
CT: control target
= control target key end

     0   :  { %s2863_s27 = smov 0   ;;  %s3314_s0 = inlined_call_operand.vmem [shape: f32[2,8,32], index: 0, kind: input, shape index: {}]   ;;  %s3315_s1 = inlined_call_operand.vmem [shape: f32[2,1,8], index: 1, kind: input, shape index: {}]   ;;  %s3316_s2 = inlined_call_operand.vmem [shape: f32[1,32], index: 2, kind: input, shape index: {}]   ;;  %s3317_s3 = inlined_call_operand.vmem [shape: f32[1,32], index: 3, kind: input, shape index: {}]   ;;  %s3318_s4 = inlined_call_operand.vmem [shape: f32[2,32,96], index: 4, kind: input, shape index: {}]   ;;  %s3319_s5 = inlined_call_operand.vmem [shape: f32[2,1,96], index: 5, kind: input, shape index: {}]   ;;  %s3320_s6 = inlined_call_operand.vmem [shape: f32[2,32,32], index: 6, kind: input, shape index: {}]   ;;  %s3321_s7 = inlined_call_operand.vmem [shape: f32[2,1,32], index: 7, kind: input, shape index: {}]   ;;  %s3322_s8 = inlined_call_operand.vmem [shape: f32[2,1,32], index: 8, kind: input, shape index: {}]   ;;  %s3323_s9 = inlined_call_operand.vmem [shape: f32[2,1,32], index: 9, kind: input, shape index: {}]   ;;  %s3324_s10 = inlined_call_operand.vmem [shape: f32[2,32,64], index: 10, kind: input, shape index: {}]   ;;  %s3325_s11 = inlined_call_operand.vmem [shape: f32[2,1,64], index: 11, kind: input, shape index: {}]   ;;  %s3326_s12 = inlined_call_operand.vmem [shape: f32[2,64,32], index: 12, kind: input, shape index: {}]   ;;  %s3327_s13 = inlined_call_operand.vmem [shape: f32[2,1,32], index: 13, kind: input, shape index: {}]   ;;  %s3328_s14 = inlined_call_operand.vmem [shape: f32[2,1,32], index: 14, kind: input, shape index: {}]   ;;  %s3329_s15 = inlined_call_operand.vmem [shape: f32[2,1,32], index: 15, kind: input, shape index: {}]   ;;  %s3330_s16 = inlined_call_operand.vmem [shape: f32[32,48], index: 16, kind: input, shape index: {}]   ;;  %s3331_s17 = inlined_call_operand.vmem [shape: f32[1,48], index: 17, kind: input, shape index: {}]   ;;  %s3332_s18 = inlined_call_operand.vmem [shape: f32[2,1,48], index: 18, kind: output, shape index: {}]  }
   0x1   :  { %3342 = sst [smem:[#allocation2_spill]] %s3314_s0 }
   0x2   :  { %3343 = sst [smem:[#allocation3_spill]] %s3315_s1 }
   0x3   :  { %3344 = sst [smem:[#allocation4_spill]] %s3316_s2 }
   0x4 LB: > { %s2334_s28 = sadd.s32 4294967295, %s2749_s27   ;;  %p2338_p0 = scmp.ge.s32.totalorder %s2749_s27, 1  ;;  %s2749_s27 = sphi %s2863_s27, %s28_s27  }
   0x5   : > { %p519_p1 = scmp.lt.s32.totalorder %s2749_s27, 3 }
   0x7   : > { %p520_p2 = pnand %p2338_p0, %p519_p1 }
   0x8   : > { %p573_p3 = scmp.lt.s32.totalorder (!%p520_p2), %s2334_s28, 1  ;;  %vm587_vm0 = vcmask (!%p520_p2), 261120   ;;  %s3345_s19 = sld [smem:[#allocation2_spill]] (!%p520_p2)  ;;  %v617_v7 = vld [vmem:[%s3318_s4] sm:$0xff] (!%p520_p2)  ;;  %v618_v8 = vld [vmem:[%s3318_s4 + $0x8] sm:$0xff] (!%p520_p2)  ;;  %v2751_v10 = vmov (!%p520_p2), 0.0  }
   0x9   : > { %523 = sbr.rel (%p520_p2) target bundleno = 5953 (0x1741), region = 92  ;;  %v622_v9 = vpack.c.bf16 (!%p520_p2), %v618_v8, %v617_v7  ;;  %2479 = vmatprep.subr.bf16.mxu1 (!%p520_p2), %v2751_v10  ;;  %v619_v11 = vld [vmem:[%s3318_s4 + $0x10] sm:$0xff] (!%p520_p2)  ;;  %v620_v12 = vld [vmem:[%s3318_s4 + $0x18] sm:$0xff] (!%p520_p2)  ;;  %2493 = vmatprep.subr.bf16.mxu0 (!%p520_p2), %v2751_v10  ;;  %vm2752_vm1 = vmmov (!%p520_p2), 0   ;;  %s3346_s0 = sld [smem:[#allocation4_spill]] (!%p520_p2)  ;;  %vm678_vm2 = vcmask (!%p520_p2), 64512  }
   0xa   : > { %v623_v13 = vpack.c.bf16 (!%p520_p2), %v620_v12, %v619_v11  ;;  %2483 = vmatprep.mubr.msk.bf16.mxu1 (!%p520_p2), %vm2752_vm1, %v2751_v10  ;;  %2495 = vmatprep.mubr.msk.bf16.mxu0 (!%p520_p2), %vm2752_vm1, %v2751_v10  ;;  %v2341_v20 = vld [vmem:[%s3317_s3] ss:$0 sm:$0xff] (!%p520_p2)  ;;  %s2753_s22 = smov (!%p520_p2), 120   ;;  %s2754_s2 = smov (!%p520_p2), 96   ;;  %vm750_vm3 = vcmask (!%p520_p2), 1043456   ;;  %vm1143_vm4 = vcmask (!%p520_p2), 130048  }
   0xb   : > { %2480 = vmatpush3.bf16.msra.mxu1 (!%p520_p2), %v622_v9  ;;  %v2342_v24 = vld [vmem:[%s3319_s5] ss:$0 sm:$0xff] (!%p520_p2)  ;;  %s2755_s23 = smov (!%p520_p2), 88   ;;  %s2756_s24 = smov (!%p520_p2), 80   ;;  %vm1145_vm5 = vcmask (!%p520_p2), 195584   ;;  %vm1316_vm6 = vcmask (!%p520_p2), 523264  }
   0xc   : > { %2481 = vmatprep.subr.bf16.mxu1 (!%p520_p2), %v2751_v10  ;;  %s2757_s25 = smov (!%p520_p2), 112   ;;  %s3339_s26 = smov (!%p520_p2), 72   ;;  %vm2243_vm7 = vcmask (!%p520_p2), 253952   ;;  %vm2261_vm8 = vcmask (!%p520_p2), 122880   ;;  %vm2276_vm13 = vcmask (!%p520_p2), 385024  }
   0xd   : > { %s3336_s20 = smov (!%p520_p2), 64   ;;  %s3335_s21 = smov (!%p520_p2), 56  }
   0xe   : > { %s3334_s30 = smov (!%p520_p2), 48  }
   0xf   : > { %2482 = vmatpush3.bf16.msra.mxu1 (!%p520_p2), %v623_v13  ;;  %v2340_v18 = vld [vmem:[%s3346_s0] ss:$0 sm:$0xff] (!%p520_p2)  ;;  %s3333_s0 = smov (!%p520_p2), 40  }
  0x10   : > { %s3358_s28 = smov (!%p573_p3, %s2334_s28), 1  ;;  %2487 = vmatprep.subr.bf16.mxu1 %v2751_v10 }
  0x11   : > { %s2339_s29 = sshll.u32 %s3358_s28, 3 }
  0x12   : > { %s576_s1 = scalar_lea.vmem %s3345_s19, %s2339_s29  ;;  %s3337_s29 = smov 104  }
  0x13   : > { %v584_v0 = vld [vmem:[%s576_s1] sm:$0xff]  ;;  %s3347_s19 = sld [smem:[#allocation3_spill]] }
  0x14   : > { %v588_v1 = vsel %vm587_vm0, %v584_v0, 0.0 }
  0x15   : > { %589 = vadd.xlane.f32.xlu0 %v588_v1 }
  0x19   : > { %s579_s1 = scalar_lea.vmem %s3347_s19, %s3358_s28  ;;  %s3338_s19 = smov 8  }
  0x1a   : > { %v2956_v42 = vld [vmem:[%s579_s1] ss:$0 sm:$0xff] }
  0xa2   : > { %v590_v2 = vpop.xlane.xlu0 %589 }
  0xa3   : > { %v592_v3 = vmul.f32 0.03125, %v590_v2 }
  0xa5   : > { %v593_v4 = vsub.f32 %v584_v0, %v592_v3 }
  0xa7   : > { %v594_v5 = vmul.f32 %v593_v4, %v593_v4 }
  0xa9   : > { %v595_v6 = vsel %vm587_vm0, %v594_v5, 0.0 }
  0xaa   : > { %596 = vadd.xlane.f32.xlu0 %v595_v6 }
 0x137   : > { %v597_v14 = vpop.xlane.xlu0 %596 }
 0x138   : > { %v598_v15 = vmul.f32 0.03125, %v597_v14 }
 0x13a   : > { %v599_v16 = vadd.f32 1e-12, %v598_v15 }
 0x13c   : > { %2689 = vrsqrt.f32 %v599_v16 }
 0x146   : > { %v2690_v17 = vpop.eup %2689 }
 0x147   : > { %v601_v19 = vmul.f32 %v2690_v17, %v593_v4 }
 0x149   : > { %v608_v21 = vmul.f32 %v2340_v18, %v601_v19 }
 0x14b   : > { %v2905_v22 = vadd.f32 %v2341_v20, %v608_v21 }
 0x14d   : > { %v621_v23 = vpack.c.bf16 %v2905_v22, %v2905_v22 }
 0x14f   : > { %2484 = vmatmul.mubr.msk.bf16.vlgmr.msra.gmra.mrb[0].mxu1 %vm587_vm0, %v621_v23 }
 0x150   : > { %2489 = vmatprep.mubr.msk.bf16.mxu1 %vm2752_vm1, %v2751_v10 }
 0x222   : > { %v668_v25 = vpop.f32.mrb[0].mxu1 }
 0x223   : > { %v669_v26 = vadd.f32 %v2342_v24, %v668_v25  ;;  %v2485_v27 = vpop.f32.mrb[1].mxu1 }
 0x224   : > { %v671_v28 = vpop.f32.mrb[2].mxu1 }
 0x225   : > { %v2915_v29 = vpack.c.bf16 %v669_v26, %v669_v26  ;;  %v2486_v30 = vpop.f32.mrb[3].mxu1 }
 0x227   : > { %794 = vrot.lane.b32.xlu0 %v2915_v29, %s2753_s22  ;;  %676 = vrot.lane.b32.xlu1 %v2915_v29, %s2754_s2 }
 0x22b   : > { %796 = vrot.lane.b32.xlu1 %v2915_v29, %s2755_s23 }
 0x22f   : > { %908 = vrot.lane.b32.xlu1 %v2915_v29, %s2756_s24 }
 0x233   : > { %906 = vrot.lane.b32.xlu1 %v2915_v29, %s2757_s25 }
 0x237   : > { %1020 = vrot.lane.b32.xlu1 %v2915_v29, %s3339_s26  ;;  %s3348_s26 = smov 72  }
 0x23b   : > { %1018 = vrot.lane.b32.xlu1 %v2915_v29, %s3337_s29  ;;  %s3349_s29 = smov 104  }
 0x299   : > { %v677_v31 = vpop.permute.xlu1 %676  ;;  %v795_v36 = vpop.permute.xlu0 %794 }
 0x29a   : > { %v683_v32 = vsel %vm678_vm2, %v677_v31, 0 }
 0x29b   : > { %2488 = vmatpush3.bf16.xpose.msra.mxu1 %v683_v32 }
 0x29c   : > { %2499 = vmatprep.subr.bf16.mxu1 %v2751_v10 }
 0x29d   : > { %v797_v33 = vpop.permute.xlu1 %796 }
 0x29e   : > { %v802_v34 = vsel %vm678_vm2, %v797_v33, 0 }
 0x2a1   : > { %v909_v35 = vpop.permute.xlu1 %908 }
 0x2a2   : > { %2490 = vmatmul.mubr.msk.bf16.vlgmr.msra.gmra.mrb[4].mxu1 %vm678_vm2, %v2915_v29  ;;  %v914_v38 = vsel %vm678_vm2, %v909_v35, 0 }
 0x2a3   : > { %2500 = vmatpush3.bf16.xpose.msra.mxu1 %v802_v34  ;;  %2501 = vmatprep.mubr.msk.bf16.mxu1 %vm2752_vm1, %v2751_v10 }
 0x2a4   : > { %2511 = vmatprep.subr.bf16.mxu1 %v2751_v10 }
 0x2a5   : > { %v907_v37 = vpop.permute.xlu1 %906 }
 0x2a9   : > { %v1021_v39 = vpop.permute.xlu1 %1020 }
 0x2aa   : > { %2502 = vmatmul.mubr.msk.bf16.vlgmr.msra.gmra.mrb[8].mxu1 %vm678_vm2, %v795_v36  ;;  %v1026_v40 = vsel %vm678_vm2, %v1021_v39, 0 }
 0x2ab   : > { %2512 = vmatpush3.bf16.xpose.msra.mxu1 %v914_v38  ;;  %2513 = vmatprep.mubr.msk.bf16.mxu1 %vm2752_vm1, %v2751_v10 }
 0x2ac   : > { %2523 = vmatprep.subr.bf16.mxu1 %v2751_v10 }
 0x2ad   : > { %v1019_v41 = vpop.permute.xlu1 %1018 }
 0x2b2   : > { %2514 = vmatmul.mubr.msk.bf16.vlgmr.msra.gmra.mrb[12].mxu1 %vm678_vm2, %v907_v37 }
 0x2b3   : > { %2524 = vmatpush3.bf16.xpose.msra.mxu1 %v1026_v40  ;;  %2525 = vmatprep.mubr.msk.bf16.mxu1 %vm2752_vm1, %v2751_v10 }
 0x2b4   : > { %2535 = vmatprep.subr.bf16.mxu1 %v2751_v10 }
 0x2ba   : > { %2526 = vmatmul.mubr.msk.bf16.vlgmr.msra.gmra.mrb[16].mxu1 %vm678_vm2, %v1019_v41 }
 0x2bb   : > { %2539 = vmatprep.mubr.msk.bf16.mxu1 %vm2752_vm1, %v2751_v10 }
 0x375   : > { %v719_v43 = vpop.f32.mrb[4].mxu1 }
 0x376   : > { %v725_v44 = vmul.f32 0.35355338, %v719_v43  ;;  %v2491_v45 = vpop.f32.mrb[5].mxu1 }
 0x377   : > { %v722_v46 = vpop.f32.mrb[6].mxu1 }
 0x378   : > { %v2492_v47 = vpop.f32.mrb[7].mxu1  ;;  %v732_v48 = vadd.f32 %v2956_v42, %v725_v44 }
 0x37a   : > { %v733_v49 = vsel %vm678_vm2, %v732_v48, -inf }
 0x37b   : > { %734 = vmax.xlane.f32.xlu1 %v733_v49 }
 0x37d   : > { %v838_v50 = vpop.f32.mrb[8].mxu1 }
 0x37e   : > { %v844_v51 = vmul.f32 0.35355338, %v838_v50  ;;  %v2503_v52 = vpop.f32.mrb[9].mxu1 }
 0x37f   : > { %v841_v53 = vpop.f32.mrb[10].mxu1 }
 0x380   : > { %v2504_v54 = vpop.f32.mrb[11].mxu1  ;;  %v845_v55 = vadd.f32 %v2956_v42, %v844_v51 }
 0x382   : > { %v846_v56 = vsel %vm678_vm2, %v845_v55, -inf }
 0x383   : > { %847 = vmax.xlane.f32.xlu0 %v846_v56 }
 0x385   : > { %v950_v57 = vpop.f32.mrb[12].mxu1 }
 0x386   : > { %v956_v58 = vmul.f32 0.35355338, %v950_v57  ;;  %v2515_v59 = vpop.f32.mrb[13].mxu1 }
 0x387   : > { %v953_v60 = vpop.f32.mrb[14].mxu1 }
 0x388   : > { %v2516_v61 = vpop.f32.mrb[15].mxu1  ;;  %v957_v62 = vadd.f32 %v2956_v42, %v956_v58 }
 0x38a   : > { %v958_v63 = vsel %vm678_vm2, %v957_v62, -inf }
 0x38b   : > { %959 = vmax.xlane.f32.xlu1 %v958_v63  ;;  %v1148_v63 = vld [vmem:[%s3320_s6 + $0x8] sm:$0xff] }
 0x38d   : > { %v1062_v0 = vpop.f32.mrb[16].mxu1 }
 0x38e   : > { %v1068_v1 = vmul.f32 0.35355338, %v1062_v0  ;;  %v2527_v2 = vpop.f32.mrb[17].mxu1 }
 0x38f   : > { %v1065_v3 = vpop.f32.mrb[18].mxu1  ;;  %v1150_v2 = vld [vmem:[%s3320_s6 + $0x18] sm:$0xff] }
 0x390   : > { %v2528_v4 = vpop.f32.mrb[19].mxu1  ;;  %v1069_v5 = vadd.f32 %v2956_v42, %v1068_v1  ;;  %v1149_v1 = vld [vmem:[%s3320_s6 + $0x10] sm:$0xff] }
 0x391   : > { %v1153_v3 = vpack.c.bf16 %v1150_v2, %v1149_v1 }
 0x392   : > { %v1070_v6 = vsel %vm678_vm2, %v1069_v5, -inf }
 0x393   : > { %1071 = vmax.xlane.f32.xlu0 %v1070_v6 }
 0x408   : > { %v735_v7 = vpop.xlane.xlu1 %734 }
 0x409   : > { %v736_v8 = vsub.f32 %v732_v48, %v735_v7 }
 0x40b   : > { %v737_v9 = vmul.f32 1.442695, %v736_v8 }
 0x40d   : > { %2691 = vpow2.f32 %v737_v9 }
 0x410   : > { %v848_v11 = vpop.xlane.xlu0 %847 }
 0x411   : > { %v849_v12 = vsub.f32 %v845_v55, %v848_v11 }
 0x413   : > { %v850_v13 = vmul.f32 1.442695, %v849_v12 }
 0x415   : > { %2693 = vpow2.f32 %v850_v13 }
 0x417   : > { %v2692_v14 = vpop.eup %2691 }
 0x418   : > { %v739_v15 = vsel %vm678_vm2, %v2692_v14, 0.0  ;;  %v960_v24 = vpop.xlane.xlu1 %959 }
 0x419   : > { %740 = vadd.xlane.f32.xlu1 %v739_v15  ;;  %v961_v25 = vsub.f32 %v957_v62, %v960_v24  ;;  %v1147_v62 = vld [vmem:[%s3320_s6] sm:$0xff] }
 0x41a   : > { %v1152_v0 = vpack.c.bf16 %v1148_v63, %v1147_v62  ;;  %v2357_v62 = vld [vmem:[%s3325_s11] ss:$0 sm:$0xff] }
 0x41b   : > { %v962_v26 = vmul.f32 1.442695, %v961_v25 }
 0x41c   : > { %2536 = vmatpush3.bf16.msra.mxu1 %v1152_v0 }
 0x41d   : > { %2537 = vmatprep.subr.bf16.mxu1 %v2751_v10 }
 0x41f   : > { %v2694_v16 = vpop.eup %2693 }
 0x420   : > { %v1072_v17 = vpop.xlane.xlu0 %1071  ;;  %v852_v18 = vsel %vm678_vm2, %v2694_v16, 0.0  ;;  %2538 = vmatpush3.bf16.msra.mxu1 %v1153_v3 }
 0x421   : > { %v1073_v19 = vsub.f32 %v1069_v5, %v1072_v17  ;;  %853 = vadd.xlane.f32.xlu0 %v852_v18  ;;  %2551 = vmatprep.subr.bf16.mxu1 %v2751_v10 }
 0x423   : > { %v1074_v20 = vmul.f32 1.442695, %v1073_v19 }
 0x425   : > { %2695 = vpow2.f32 %v1074_v20  ;;  %v2353_v20 = vld [vmem:[%s3321_s7] ss:$0 sm:$0xff] }
 0x426   : > { %2697 = vpow2.f32 %v962_v26 }
 0x42a   : > { %745 = vrot.lane.b32.xlu1 %v2915_v29, %s3336_s20  ;;  %s3354_s20 = smov 8  }
 0x42f   : > { %v2696_v21 = vpop.eup %2695 }
 0x430   : > { %v1076_v23 = vsel %vm678_vm2, %v2696_v21, 0.0  ;;  %v2698_v27 = vpop.eup %2697 }
 0x431   : > { %1077 = vadd.xlane.f32.xlu0 %v1076_v23  ;;  %v964_v28 = vsel %vm678_vm2, %v2698_v27, 0.0 }
 0x447   : > { %858 = vrot.lane.b32.xlu0 %v2915_v29, %s3335_s21  ;;  %s3340_s21 = smov 24  }
 0x44e   : > { %965 = vadd.xlane.f32.xlu1 %v964_v28 }
 0x45f   : > { %970 = vrot.lane.b32.xlu1 %v2915_v29, %s3334_s30 }
 0x463   : > { %1082 = vrot.lane.b32.xlu1 %v2915_v29, %s3333_s0  ;;  %s3341_s0 = smov 16  }
 0x4a6   : > { %v741_v30 = vpop.xlane.xlu1 %740 }
 0x4a7   : > { %2699 = vrcp.f32 %v741_v30 }
 0x4aa   : > { %v746_v31 = vpop.permute.xlu1 %745 }
 0x4ab   : > { %v752_v32 = vsel %vm750_vm3, %v746_v31, 0 }
 0x4ac   : > { %2494 = vmatpush3.bf16.msra.mxu0 %v752_v32 }
 0x4ad   : > { %2505 = vmatprep.subr.bf16.mxu0 %v2751_v10 }
 0x4ae   : > { %v854_v34 = vpop.xlane.xlu0 %853 }
 0x4af   : > { %2701 = vrcp.f32 %v854_v34 }
 0x4b1   : > { %v2700_v33 = vpop.eup %2699 }
 0x4b2   : > { %v743_v35 = vmul.f32 %v2700_v33, %v2692_v14 }
 0x4b4   : > { %v744_v36 = vpack.c.bf16 %v743_v35, %v743_v35  ;;  %v1234_v35 = vld [vmem:[%s3324_s10] sm:$0xff] }
 0x4b6   : > { %2496 = vmatmul.mubr.msk.bf16.vlgmr.msra.gmra.mrb[0].mxu0 %vm678_vm2, %v744_v36  ;;  %v1235_v36 = vld [vmem:[%s3324_s10 + $0x8] sm:$0xff] }
 0x4b7   : > { %2507 = vmatprep.mubr.msk.bf16.mxu0 %vm2752_vm1, %v2751_v10 }
 0x4b9   : > { %v2702_v29 = vpop.eup %2701 }
 0x4ba   : > { %v856_v38 = vmul.f32 %v2702_v29, %v2694_v16  ;;  %v1239_v29 = vpack.c.bf16 %v1235_v36, %v1234_v35  ;;  %v2361_v36 = vld [vmem:[%s3328_s14] ss:$0 sm:$0xff] }
 0x4bc   : > { %v857_v41 = vpack.c.bf16 %v856_v38, %v856_v38 }
 0x4be   : > { %v1078_v37 = vpop.xlane.xlu0 %1077 }
 0x4c2   : > { %v859_v39 = vpop.permute.xlu0 %858 }
 0x4c3   : > { %v864_v40 = vsel %vm750_vm3, %v859_v39, 0 }
 0x4c4   : > { %2506 = vmatpush3.bf16.msra.mxu0 %v864_v40 }
 0x4c5   : > { %2517 = vmatprep.subr.bf16.mxu0 %v2751_v10 }
 0x4c7   : > { %2508 = vmatmul.mubr.msk.bf16.vlgmr.msra.gmra.mrb[4].mxu0 %vm678_vm2, %v857_v41 }
 0x4c8   : > { %2519 = vmatprep.mubr.msk.bf16.mxu0 %vm2752_vm1, %v2751_v10 }
 0x4db   : > { %v966_v43 = vpop.xlane.xlu1 %965 }
 0x4dc   : > { %2703 = vrcp.f32 %v966_v43 }
 0x4dd   : > { %2705 = vrcp.f32 %v1078_v37  ;;  %v1237_v37 = vld [vmem:[%s3324_s10 + $0x18] sm:$0xff] }
 0x4df   : > { %v971_v44 = vpop.permute.xlu1 %970 }
 0x4e0   : > { %v976_v45 = vsel %vm750_vm3, %v971_v44, 0  ;;  %v2355_v44 = vld [vmem:[%s3322_s8] ss:$0 sm:$0xff] }
 0x4e1   : > { %2518 = vmatpush3.bf16.msra.mxu0 %v976_v45 }
 0x4e2   : > { %2529 = vmatprep.subr.bf16.mxu0 %v2751_v10 }
 0x4e3   : > { %v1083_v48 = vpop.permute.xlu1 %1082 }
 0x4e4   : > { %v1088_v51 = vsel %vm750_vm3, %v1083_v48, 0 }
 0x4e6   : > { %v2704_v46 = vpop.eup %2703 }
 0x4e7   : > { %v968_v47 = vmul.f32 %v2704_v46, %v2698_v27  ;;  %v2706_v50 = vpop.eup %2705  ;;  %v2356_v46 = vld [vmem:[%s3323_s9] ss:$0 sm:$0xff] }
 0x4e8   : > { %v1080_v52 = vmul.f32 %v2706_v50, %v2696_v21  ;;  %v1296_v50 = vld [vmem:[%s3326_s12] sm:$0xff] }
 0x4e9   : > { %v969_v49 = vpack.c.bf16 %v968_v47, %v968_v47 }
 0x4ea   : > { %v1081_v53 = vpack.c.bf16 %v1080_v52, %v1080_v52 }
 0x4eb   : > { %2520 = vmatmul.mubr.msk.bf16.vlgmr.msra.gmra.mrb[8].mxu0 %vm678_vm2, %v969_v49 }
 0x4ec   : > { %2530 = vmatpush3.bf16.msra.mxu0 %v1088_v51  ;;  %2531 = vmatprep.mubr.msk.bf16.mxu0 %vm2752_vm1, %v2751_v10  ;;  %v1297_v51 = vld [vmem:[%s3326_s12 + $0x8] sm:$0xff] }
 0x4ed   : > { %2543 = vmatprep.subr.bf16.mxu0 %v2751_v10  ;;  %v1305_v52 = vpack.c.bf16 %v1297_v51, %v1296_v50 }
 0x4f3   : > { %2532 = vmatmul.mubr.msk.bf16.vlgmr.msra.gmra.mrb[12].mxu0 %vm678_vm2, %v1081_v53  ;;  %v1298_v53 = vld [vmem:[%s3326_s12 + $0x10] sm:$0xff] }
 0x4f4   : > { %2547 = vmatprep.mubr.msk.bf16.mxu0 %vm2752_vm1, %v2751_v10  ;;  %2544 = vmatpush3.bf16.msra.mxu0 %v1239_v29 }
 0x4f5   : > { %2545 = vmatprep.subr.bf16.mxu0 %v2751_v10 }
 0x589   : > { %v788_v54 = vpop.f32.mrb[0].mxu0 }
 0x58a   : > { %v2497_v55 = vpop.f32.mrb[1].mxu0 }
 0x58b   : > { %v791_v56 = vpop.f32.mrb[2].mxu0 }
 0x58c   : > { %v2498_v57 = vpop.f32.mrb[3].mxu0  ;;  %v1300_v56 = vld [vmem:[%s3326_s12 + $0x20] sm:$0xff] }
 0x58d   : > { %v1301_v57 = vld [vmem:[%s3326_s12 + $0x28] sm:$0xff] }
 0x59a   : > { %v900_v58 = vpop.f32.mrb[4].mxu0 }
 0x59b   : > { %1131 = vrot.lane.b32.xlu0 %v900_v58, %s3338_s19  ;;  %v2509_v59 = vpop.f32.mrb[5].mxu0  ;;  %v1307_v58 = vpack.c.bf16 %v1301_v57, %v1300_v56 }
 0x59c   : > { %v903_v60 = vpop.f32.mrb[6].mxu0  ;;  %v1302_v59 = vld [vmem:[%s3326_s12 + $0x30] sm:$0xff] }
 0x59d   : > { %v2510_v61 = vpop.f32.mrb[7].mxu0  ;;  %v1303_v60 = vld [vmem:[%s3326_s12 + $0x38] sm:$0xff] }
 0x59e   : > { %v1308_v61 = vpack.c.bf16 %v1303_v60, %v1302_v59 }
 0x5be   : > { %v1012_v4 = vpop.f32.mrb[8].mxu0 }
 0x5bf   : > { %1135 = vrot.lane.b32.xlu1 %v1012_v4, %s3341_s0  ;;  %v2521_v5 = vpop.f32.mrb[9].mxu0 }
 0x5c0   : > { %v1015_v6 = vpop.f32.mrb[10].mxu0 }
 0x5c1   : > { %v2522_v7 = vpop.f32.mrb[11].mxu0 }
 0x5c6   : > { %v1124_v8 = vpop.f32.mrb[12].mxu0 }
 0x5c7   : > { %1139 = vrot.lane.b32.xlu0 %v1124_v8, %s3340_s21  ;;  %v2533_v9 = vpop.f32.mrb[13].mxu0 }
 0x5c8   : > { %v1127_v11 = vpop.f32.mrb[14].mxu0 }
 0x5c9   : > { %v2534_v12 = vpop.f32.mrb[15].mxu0  ;;  %v2359_v11 = vld [vmem:[%s3327_s13] ss:$0 sm:$0xff] }
 0x60d   : > { %v1132_v13 = vpop.permute.xlu0 %1131 }
 0x60e   : > { %v1142_v15 = vsel %vm678_vm2, %v788_v54, %v1132_v13  ;;  %v1299_v54 = vld [vmem:[%s3326_s12 + $0x18] sm:$0xff] }
 0x60f   : > { %v1306_v55 = vpack.c.bf16 %v1299_v54, %v1298_v53 }
 0x631   : > { %v1136_v14 = vpop.permute.xlu1 %1135 }
 0x632   : > { %v1144_v16 = vsel %vm1143_vm4, %v1142_v15, %v1136_v14 }
 0x639   : > { %v1140_v17 = vpop.permute.xlu0 %1139 }
 0x63a   : > { %v1146_v18 = vsel %vm1145_vm5, %v1144_v16, %v1140_v17 }
 0x63b   : > { %v1151_v19 = vpack.c.bf16 %v1146_v18, %v1146_v18 }
 0x63d   : > { %2540 = vmatmul.mubr.msk.bf16.vlgmr.msra.gmra.mrb[20].mxu1 %vm587_vm0, %v1151_v19 }
 0x63e   : > { %2559 = vmatprep.mubr.msk.bf16.mxu1 %vm2752_vm1, %v2751_v10  ;;  %2552 = vmatpush3.bf16.msra.mxu1 %v1305_v52 }
 0x63f   : > { %2553 = vmatprep.subr.bf16.mxu1 %v2751_v10 }
 0x642   : > { %2554 = vmatpush3.bf16.msra.mxu1 %v1306_v55 }
 0x643   : > { %2555 = vmatprep.subr.bf16.mxu1 %v2751_v10 }
 0x646   : > { %2556 = vmatpush3.bf16.msra.mxu1 %v1307_v58 }
 0x647   : > { %2557 = vmatprep.subr.bf16.mxu1 %v2751_v10 }
 0x64a   : > { %2558 = vmatpush3.bf16.msra.mxu1 %v1308_v61 }
 0x64b   : > { %2577 = vmatprep.subr.bf16.mxu1 %v2751_v10 }
 0x710   : > { %v1198_v21 = vpop.f32.mrb[20].mxu1 }
 0x711   : > { %v1199_v23 = vadd.f32 %v2353_v20, %v1198_v21  ;;  %v2541_v24 = vpop.f32.mrb[21].mxu1 }
 0x712   : > { %v1201_v25 = vpop.f32.mrb[22].mxu1 }
 0x713   : > { %v2542_v26 = vpop.f32.mrb[23].mxu1  ;;  %v1204_v27 = vadd.f32 %v1199_v23, %v2905_v22  ;;  %v1236_v22 = vld [vmem:[%s3324_s10 + $0x10] sm:$0xff]  ;;  %v2363_v25 = vld [vmem:[%s3318_s4 + $0x20] sm:$0xff] }
 0x714   : > { %v1240_v38 = vpack.c.bf16 %v1237_v37, %v1236_v22  ;;  %v2364_v26 = vld [vmem:[%s3318_s4 + $0x28] sm:$0xff]  ;;  %v2362_v22 = vld [vmem:[%s3329_s15] ss:$0 sm:$0xff] }
 0x715   : > { %v1207_v28 = vsel %vm587_vm0, %v1204_v27, 0.0 }
 0x716   : > { %1208 = vadd.xlane.f32.xlu1 %v1207_v28  ;;  %2546 = vmatpush3.bf16.msra.mxu0 %v1240_v38  ;;  %v2365_v28 = vld [vmem:[%s3318_s4 + $0x30] sm:$0xff] }
 0x717   : > { %2563 = vmatprep.subr.bf16.mxu0 %v2751_v10 }
 0x7a3   : > { %v1209_v30 = vpop.xlane.xlu1 %1208 }
 0x7a4   : > { %v1210_v31 = vmul.f32 0.03125, %v1209_v30  ;;  %v2366_v30 = vld [vmem:[%s3318_s4 + $0x38] sm:$0xff] }
 0x7a6   : > { %v1211_v32 = vsub.f32 %v1204_v27, %v1210_v31  ;;  %v1396_v27 = vpack.c.bf16 %v2364_v26, %v2363_v25  ;;  %v1397_v31 = vpack.c.bf16 %v2366_v30, %v2365_v28 }
 0x7a8   : > { %v1212_v33 = vmul.f32 %v1211_v32, %v1211_v32 }
 0x7aa   : > { %v1213_v34 = vsel %vm587_vm0, %v1212_v33, 0.0 }
 0x7ab   : > { %1214 = vadd.xlane.f32.xlu0 %v1213_v34 }
 0x838   : > { %v1215_v39 = vpop.xlane.xlu0 %1214 }
 0x839   : > { %v1216_v40 = vmul.f32 0.03125, %v1215_v39 }
 0x83b   : > { %v1217_v41 = vadd.f32 1e-12, %v1216_v40  ;;  %v2368_v40 = vld [vmem:[%s3319_s5 + $0x1] ss:$0 sm:$0xff] }
 0x83d   : > { %2707 = vrsqrt.f32 %v1217_v41 }
 0x847   : > { %v2708_v43 = vpop.eup %2707 }
 0x848   : > { %v1219_v45 = vmul.f32 %v2708_v43, %v1211_v32 }
 0x84a   : > { %v1226_v47 = vmul.f32 %v2355_v44, %v1219_v45 }
 0x84c   : > { %v1233_v48 = vadd.f32 %v2356_v46, %v1226_v47 }
 0x84e   : > { %v1238_v49 = vpack.c.bf16 %v1233_v48, %v1233_v48 }
 0x850   : > { %2548 = vmatmul.mubr.msk.bf16.vlgmr.msra.gmra.mrb[16].mxu0 %vm587_vm0, %v1238_v49 }
 0x851   : > { %2567 = vmatprep.mubr.msk.bf16.mxu0 %vm2752_vm1, %v2751_v10  ;;  %2564 = vmatpush3.bf16.msra.mxu0 %v1396_v27 }
 0x852   : > { %2565 = vmatprep.subr.bf16.mxu0 %v2751_v10 }
 0x855   : > { %2566 = vmatpush3.bf16.msra.mxu0 %v1397_v31 }
 0x856   : > { %2571 = vmatprep.subr.bf16.mxu0 %v2751_v10 }
 0x923   : > { %v1285_v63 = vpop.f32.mrb[16].mxu0 }
 0x924   : > { %v1286_v0 = vadd.f32 %v2357_v62, %v1285_v63  ;;  %v2549_v1 = vpop.f32.mrb[17].mxu0 }
 0x925   : > { %v1288_v2 = vpop.f32.mrb[18].mxu0 }
 0x926   : > { %v1292_v3 = vmul.f32 0.70710677, %v1286_v0  ;;  %v2550_v4 = vpop.f32.mrb[19].mxu0  ;;  %v1291_v6 = vmul.f32 0.5, %v1286_v0 }
 0x928   : > { %2709 = verf.f32 %v1292_v3 }
 0x932   : > { %v2710_v5 = vpop.eup %2709 }
 0x933   : > { %v1294_v7 = vadd.f32 1.0, %v2710_v5 }
 0x935   : > { %v1295_v8 = vmul.f32 %v1294_v7, %v1291_v6 }
 0x937   : > { %v1304_v9 = vpack.c.bf16 %v1295_v8, %v1295_v8 }
 0x939   : > { %2560 = vmatmul.mubr.msk.bf16.vlgmr.msra.gmra.mrb[24].mxu1 %vm1316_vm6, %v1304_v9 }
 0x93a   : > { %2579 = vmatprep.mubr.msk.bf16.mxu1 %vm2752_vm1, %v2751_v10 }
 0xa0c   : > { %v1354_v12 = vpop.f32.mrb[24].mxu1 }
 0xa0d   : > { %v1355_v13 = vadd.f32 %v2359_v11, %v1354_v12  ;;  %v2561_v14 = vpop.f32.mrb[25].mxu1 }
 0xa0e   : > { %v1357_v15 = vpop.f32.mrb[26].mxu1 }
 0xa0f   : > { %v2562_v16 = vpop.f32.mrb[27].mxu1  ;;  %v1360_v17 = vadd.f32 %v1355_v13, %v1233_v48 }
 0xa11   : > { %v1363_v18 = vsel %vm587_vm0, %v1360_v17, 0.0 }
 0xa12   : > { %1364 = vadd.xlane.f32.xlu0 %v1363_v18 }
 0xa9f   : > { %v1365_v19 = vpop.xlane.xlu0 %1364 }
 0xaa0   : > { %v1366_v20 = vmul.f32 0.03125, %v1365_v19 }
 0xaa2   : > { %v1367_v21 = vsub.f32 %v1360_v17, %v1366_v20 }
 0xaa4   : > { %v1368_v23 = vmul.f32 %v1367_v21, %v1367_v21 }
 0xaa6   : > { %v1369_v24 = vsel %vm587_vm0, %v1368_v23, 0.0 }
 0xaa7   : > { %1370 = vadd.xlane.f32.xlu1 %v1369_v24 }
 0xb34   : > { %v1371_v32 = vpop.xlane.xlu1 %1370 }
 0xb35   : > { %v1372_v33 = vmul.f32 0.03125, %v1371_v32 }
 0xb37   : > { %v1373_v34 = vadd.f32 1e-12, %v1372_v33 }
 0xb39   : > { %2711 = vrsqrt.f32 %v1373_v34 }
 0xb43   : > { %v2712_v35 = vpop.eup %2711 }
 0xb44   : > { %v1375_v29 = vmul.f32 %v2712_v35, %v1367_v21 }
 0xb46   : > { %v1382_v37 = vmul.f32 %v2361_v36, %v1375_v29 }
 0xb48   : > { %v3109_v38 = vadd.f32 %v2362_v22, %v1382_v37 }
 0xb4a   : > { %v1395_v39 = vpack.c.bf16 %v3109_v38, %v3109_v38 }
 0xb4c   : > { %2568 = vmatmul.mubr.msk.bf16.vlgmr.msra.gmra.mrb[20].mxu0 %vm587_vm0, %v1395_v39 }
 0xb4d   : > { %2573 = vmatprep.mubr.msk.bf16.mxu0 %vm2752_vm1, %v2751_v10 }
 0xc1f   : > { %v1443_v41 = vpop.f32.mrb[20].mxu0 }
 0xc20   : > { %v1444_v43 = vadd.f32 %v2368_v40, %v1443_v41  ;;  %v2569_v44 = vpop.f32.mrb[21].mxu0 }
 0xc21   : > { %v1446_v45 = vpop.f32.mrb[22].mxu0 }
 0xc22   : > { %v3119_v46 = vpack.c.bf16 %v1444_v43, %v1444_v43  ;;  %v2570_v47 = vpop.f32.mrb[23].mxu0 }
 0xc24   : > { %1563 = vrot.lane.b32.xlu1 %v3119_v46, %s2755_s23  ;;  %1451 = vrot.lane.b32.xlu0 %v3119_v46, %s2754_s2  ;;  %s3351_s23 = smov 56  }
 0xc28   : > { %1561 = vrot.lane.b32.xlu1 %v3119_v46, %s2753_s22  ;;  %1675 = vrot.lane.b32.xlu0 %v3119_v46, %s2756_s24  ;;  %s3350_s22 = smov 64   ;;  %s3352_s24 = smov 48  }
 0xc2c   : > { %1673 = vrot.lane.b32.xlu1 %v3119_v46, %s2757_s25  ;;  %1787 = vrot.lane.b32.xlu0 %v3119_v46, %s3348_s26  ;;  %s3353_s25 = smov 40  }
 0xc30   : > { %1785 = vrot.lane.b32.xlu1 %v3119_v46, %s3349_s29 }
 0xc96   : > { %v1452_v48 = vpop.permute.xlu0 %1451  ;;  %v1564_v50 = vpop.permute.xlu1 %1563 }
 0xc97   : > { %v1457_v49 = vsel %vm678_vm2, %v1452_v48, 0  ;;  %v1569_v51 = vsel %vm678_vm2, %v1564_v50, 0 }
 0xc98   : > { %2572 = vmatpush3.bf16.xpose.msra.mxu0 %v1457_v49 }
 0xc99   : > { %2583 = vmatprep.subr.bf16.mxu0 %v2751_v10 }
 0xc9a   : > { %v1676_v52 = vpop.permute.xlu0 %1675  ;;  %v1562_v53 = vpop.permute.xlu1 %1561 }
 0xc9b   : > { %v1681_v54 = vsel %vm678_vm2, %v1676_v52, 0 }
 0xc9e   : > { %v1788_v55 = vpop.permute.xlu0 %1787  ;;  %v1674_v56 = vpop.permute.xlu1 %1673 }
 0xc9f   : > { %2574 = vmatmul.mubr.msk.bf16.vlgmr.msra.gmra.mrb[24].mxu0 %vm678_vm2, %v3119_v46  ;;  %v1793_v57 = vsel %vm678_vm2, %v1788_v55, 0 }
 0xca0   : > { %2584 = vmatpush3.bf16.xpose.msra.mxu0 %v1569_v51  ;;  %2585 = vmatprep.mubr.msk.bf16.mxu0 %vm2752_vm1, %v2751_v10 }
 0xca1   : > { %2595 = vmatprep.subr.bf16.mxu0 %v2751_v10 }
 0xca2   : > { %v1786_v58 = vpop.permute.xlu1 %1785 }
 0xca7   : > { %2586 = vmatmul.mubr.msk.bf16.vlgmr.msra.gmra.mrb[28].mxu0 %vm678_vm2, %v1562_v53 }
 0xca8   : > { %2596 = vmatpush3.bf16.xpose.msra.mxu0 %v1681_v54  ;;  %2597 = vmatprep.mubr.msk.bf16.mxu0 %vm2752_vm1, %v2751_v10 }
 0xca9   : > { %2607 = vmatprep.subr.bf16.mxu0 %v2751_v10 }
 0xcaf   : > { %2598 = vmatmul.mubr.msk.bf16.vlgmr.msra.gmra.mrb[32].mxu0 %vm678_vm2, %v1674_v56 }
 0xcb0   : > { %2608 = vmatpush3.bf16.xpose.msra.mxu0 %v1793_v57  ;;  %2609 = vmatprep.mubr.msk.bf16.mxu0 %vm2752_vm1, %v2751_v10 }
 0xcb1   : > { %2619 = vmatprep.subr.bf16.mxu0 %v2751_v10 }
 0xcb7   : > { %2610 = vmatmul.mubr.msk.bf16.vlgmr.msra.gmra.mrb[36].mxu0 %vm678_vm2, %v1786_v58 }
 0xcb8   : > { %2623 = vmatprep.mubr.msk.bf16.mxu0 %vm2752_vm1, %v2751_v10 }
 0xd72   : > { %v1493_v59 = vpop.f32.mrb[24].mxu0 }
 0xd73   : > { %v1499_v60 = vmul.f32 0.35355338, %v1493_v59  ;;  %v2575_v61 = vpop.f32.mrb[25].mxu0 }
 0xd74   : > { %v1496_v62 = vpop.f32.mrb[26].mxu0 }
 0xd75   : > { %v2576_v63 = vpop.f32.mrb[27].mxu0  ;;  %v1500_v0 = vadd.f32 %v2956_v42, %v1499_v60 }
 0xd77   : > { %v1501_v1 = vsel %vm678_vm2, %v1500_v0, -inf }
 0xd78   : > { %1502 = vmax.xlane.f32.xlu0 %v1501_v1 }
 0xd7a   : > { %v1605_v2 = vpop.f32.mrb[28].mxu0 }
 0xd7b   : > { %v1611_v3 = vmul.f32 0.35355338, %v1605_v2  ;;  %v2587_v4 = vpop.f32.mrb[29].mxu0 }
 0xd7c   : > { %v1608_v5 = vpop.f32.mrb[30].mxu0 }
 0xd7d   : > { %v2588_v6 = vpop.f32.mrb[31].mxu0  ;;  %v1612_v7 = vadd.f32 %v2956_v42, %v1611_v3 }
 0xd7f   : > { %v1613_v8 = vsel %vm678_vm2, %v1612_v7, -inf }
 0xd80   : > { %1614 = vmax.xlane.f32.xlu1 %v1613_v8 }
 0xd82   : > { %v1717_v9 = vpop.f32.mrb[32].mxu0 }
 0xd83   : > { %v1723_v11 = vmul.f32 0.35355338, %v1717_v9  ;;  %v2599_v12 = vpop.f32.mrb[33].mxu0 }
 0xd84   : > { %v1720_v13 = vpop.f32.mrb[34].mxu0 }
 0xd85   : > { %v2600_v14 = vpop.f32.mrb[35].mxu0  ;;  %v1724_v15 = vadd.f32 %v2956_v42, %v1723_v11 }
 0xd86   : > { %v2378_v14 = vld [vmem:[%s3320_s6 + $0x20] sm:$0xff] }
 0xd87   : > { %v1725_v16 = vsel %vm678_vm2, %v1724_v15, -inf }
 0xd88   : > { %1726 = vmax.xlane.f32.xlu0 %v1725_v16 }
 0xd8a   : > { %v1829_v17 = vpop.f32.mrb[36].mxu0 }
 0xd8b   : > { %v1835_v18 = vmul.f32 0.35355338, %v1829_v17  ;;  %v2611_v19 = vpop.f32.mrb[37].mxu0  ;;  %v2380_v17 = vld [vmem:[%s3320_s6 + $0x30] sm:$0xff] }
 0xd8c   : > { %v1832_v20 = vpop.f32.mrb[38].mxu0 }
 0xd8d   : > { %v2612_v21 = vpop.f32.mrb[39].mxu0  ;;  %v1836_v23 = vadd.f32 %v2956_v42, %v1835_v18  ;;  %v2381_v18 = vld [vmem:[%s3320_s6 + $0x38] sm:$0xff] }
 0xd8e   : > { %v1919_v19 = vpack.c.bf16 %v2381_v18, %v2380_v17 }
 0xd8f   : > { %v1837_v24 = vsel %vm678_vm2, %v1836_v23, -inf }
 0xd90   : > { %1838 = vmax.xlane.f32.xlu0 %v1837_v24 }
 0xe05   : > { %v1503_v25 = vpop.xlane.xlu0 %1502 }
 0xe06   : > { %v1504_v26 = vsub.f32 %v1500_v0, %v1503_v25 }
 0xe08   : > { %v1505_v27 = vmul.f32 1.442695, %v1504_v26 }
 0xe0a   : > { %2713 = vpow2.f32 %v1505_v27 }
 0xe0d   : > { %v1615_v28 = vpop.xlane.xlu1 %1614 }
 0xe0e   : > { %v1616_v30 = vsub.f32 %v1612_v7, %v1615_v28 }
 0xe10   : > { %v1617_v31 = vmul.f32 1.442695, %v1616_v30 }
 0xe12   : > { %2715 = vpow2.f32 %v1617_v31 }
 0xe14   : > { %v2714_v32 = vpop.eup %2713 }
 0xe15   : > { %v1507_v33 = vsel %vm678_vm2, %v2714_v32, 0.0  ;;  %v1727_v34 = vpop.xlane.xlu0 %1726 }
 0xe16   : > { %1508 = vadd.xlane.f32.xlu1 %v1507_v33  ;;  %v1728_v40 = vsub.f32 %v1724_v15, %v1727_v34  ;;  %v2379_v15 = vld [vmem:[%s3320_s6 + $0x28] sm:$0xff] }
 0xe17   : > { %v1918_v16 = vpack.c.bf16 %v2379_v15, %v2378_v14 }
 0xe18   : > { %v1729_v41 = vmul.f32 1.442695, %v1728_v40 }
 0xe19   : > { %2620 = vmatpush3.bf16.msra.mxu0 %v1918_v16 }
 0xe1a   : > { %2621 = vmatprep.subr.bf16.mxu0 %v2751_v10 }
 0xe1c   : > { %v2716_v35 = vpop.eup %2715 }
 0xe1d   : > { %v1839_v36 = vpop.xlane.xlu0 %1838  ;;  %v1619_v42 = vsel %vm678_vm2, %v2716_v35, 0.0  ;;  %2622 = vmatpush3.bf16.msra.mxu0 %v1919_v19 }
 0xe1e   : > { %v1840_v29 = vsub.f32 %v1836_v23, %v1839_v36  ;;  %1620 = vadd.xlane.f32.xlu0 %v1619_v42  ;;  %2635 = vmatprep.subr.bf16.mxu0 %v2751_v10  ;;  %v2383_v42 = vld [vmem:[%s3321_s7 + $0x1] ss:$0 sm:$0xff] }
 0xe20   : > { %v1841_v22 = vmul.f32 1.442695, %v1840_v29 }
 0xe22   : > { %2717 = vpow2.f32 %v1841_v22 }
 0xe23   : > { %2719 = vpow2.f32 %v1729_v41 }
 0xe27   : > { %1513 = vrot.lane.b32.xlu1 %v3119_v46, %s3350_s22 }
 0xe2c   : > { %v2718_v37 = vpop.eup %2717 }
 0xe2d   : > { %v1843_v39 = vsel %vm678_vm2, %v2718_v37, 0.0  ;;  %v2720_v43 = vpop.eup %2719 }
 0xe2e   : > { %1844 = vadd.xlane.f32.xlu0 %v1843_v39  ;;  %v1731_v44 = vsel %vm678_vm2, %v2720_v43, 0.0 }
 0xe44   : > { %1625 = vrot.lane.b32.xlu0 %v3119_v46, %s3351_s23  ;;  %s3355_s23 = smov 16  }
 0xe4b   : > { %1732 = vadd.xlane.f32.xlu1 %v1731_v44 }
 0xe5c   : > { %1737 = vrot.lane.b32.xlu1 %v3119_v46, %s3352_s24  ;;  %s3356_s24 = smov 24  }
 0xe60   : > { %1849 = vrot.lane.b32.xlu1 %v3119_v46, %s3353_s25 }
 0xea3   : > { %v1509_v45 = vpop.xlane.xlu1 %1508 }
 0xea4   : > { %2721 = vrcp.f32 %v1509_v45 }
 0xea7   : > { %v1514_v47 = vpop.permute.xlu1 %1513 }
 0xea8   : > { %v1519_v48 = vsel %vm750_vm3, %v1514_v47, 0 }
 0xea9   : > { %2578 = vmatpush3.bf16.msra.mxu1 %v1519_v48 }
 0xeaa   : > { %2589 = vmatprep.subr.bf16.mxu1 %v2751_v10 }
 0xeab   : > { %v1621_v50 = vpop.xlane.xlu0 %1620 }
 0xeac   : > { %2723 = vrcp.f32 %v1621_v50  ;;  %v2389_v50 = vld [vmem:[%s3324_s10 + $0x20] sm:$0xff] }
 0xeae   : > { %v2722_v49 = vpop.eup %2721 }
 0xeaf   : > { %v1511_v51 = vmul.f32 %v2722_v49, %v2714_v32 }
 0xeb1   : > { %v1512_v52 = vpack.c.bf16 %v1511_v51, %v1511_v51  ;;  %v2390_v51 = vld [vmem:[%s3324_s10 + $0x28] sm:$0xff] }
 0xeb3   : > { %2580 = vmatmul.mubr.msk.bf16.vlgmr.msra.gmra.mrb[28].mxu1 %vm678_vm2, %v1512_v52  ;;  %v2009_v52 = vpack.c.bf16 %v2390_v51, %v2389_v50  ;;  %v2409_v50 = vld [vmem:[%s3328_s14 + $0x1] ss:$0 sm:$0xff] }
 0xeb4   : > { %2591 = vmatprep.mubr.msk.bf16.mxu1 %vm2752_vm1, %v2751_v10 }
 0xeb6   : > { %v2724_v53 = vpop.eup %2723 }
 0xeb7   : > { %v1623_v54 = vmul.f32 %v2724_v53, %v2716_v35  ;;  %v2392_v53 = vld [vmem:[%s3324_s10 + $0x38] sm:$0xff] }
 0xeb9   : > { %v1624_v57 = vpack.c.bf16 %v1623_v54, %v1623_v54 }
 0xebb   : > { %v1845_v46 = vpop.xlane.xlu0 %1844 }
 0xebf   : > { %v1626_v55 = vpop.permute.xlu0 %1625 }
 0xec0   : > { %v1631_v56 = vsel %vm750_vm3, %v1626_v55, 0 }
 0xec1   : > { %2590 = vmatpush3.bf16.msra.mxu1 %v1631_v56 }
 0xec2   : > { %2601 = vmatprep.subr.bf16.mxu1 %v2751_v10 }
 0xec4   : > { %2592 = vmatmul.mubr.msk.bf16.vlgmr.msra.gmra.mrb[32].mxu1 %vm678_vm2, %v1624_v57 }
 0xec5   : > { %2603 = vmatprep.mubr.msk.bf16.mxu1 %vm2752_vm1, %v2751_v10 }
 0xed8   : > { %v1733_v58 = vpop.xlane.xlu1 %1732 }
 0xed9   : > { %2725 = vrcp.f32 %v1733_v58  ;;  %v2387_v58 = vld [vmem:[%s3322_s8 + $0x1] ss:$0 sm:$0xff] }
 0xeda   : > { %2727 = vrcp.f32 %v1845_v46 }
 0xedc   : > { %v1738_v59 = vpop.permute.xlu1 %1737 }
 0xedd   : > { %v1743_v60 = vsel %vm750_vm3, %v1738_v59, 0 }
 0xede   : > { %2602 = vmatpush3.bf16.msra.mxu1 %v1743_v60  ;;  %v2388_v60 = vld [vmem:[%s3323_s9 + $0x1] ss:$0 sm:$0xff] }
 0xedf   : > { %2613 = vmatprep.subr.bf16.mxu1 %v2751_v10 }
 0xee0   : > { %v1850_v63 = vpop.permute.xlu1 %1849 }
 0xee1   : > { %v1855_v2 = vsel %vm750_vm3, %v1850_v63, 0 }
 0xee3   : > { %v2726_v61 = vpop.eup %2725 }
 0xee4   : > { %v1735_v62 = vmul.f32 %v2726_v61, %v2720_v43  ;;  %v2728_v1 = vpop.eup %2727 }
 0xee5   : > { %v1847_v3 = vmul.f32 %v2728_v1, %v2718_v37  ;;  %v2397_v1 = vld [vmem:[%s3326_s12 + $0x48] sm:$0xff] }
 0xee6   : > { %v1736_v0 = vpack.c.bf16 %v1735_v62, %v1735_v62 }
 0xee7   : > { %v1848_v4 = vpack.c.bf16 %v1847_v3, %v1847_v3  ;;  %v2398_v3 = vld [vmem:[%s3326_s12 + $0x50] sm:$0xff] }
 0xee8   : > { %2604 = vmatmul.mubr.msk.bf16.vlgmr.msra.gmra.mrb[36].mxu1 %vm678_vm2, %v1736_v0  ;;  %v2396_v0 = vld [vmem:[%s3326_s12 + $0x40] sm:$0xff] }
 0xee9   : > { %2614 = vmatpush3.bf16.msra.mxu1 %v1855_v2  ;;  %2615 = vmatprep.mubr.msk.bf16.mxu1 %vm2752_vm1, %v2751_v10  ;;  %v2077_v2 = vpack.c.bf16 %v2397_v1, %v2396_v0 }
 0xeea   : > { %2627 = vmatprep.subr.bf16.mxu1 %v2751_v10 }
 0xef0   : > { %2616 = vmatmul.mubr.msk.bf16.vlgmr.msra.gmra.mrb[40].mxu1 %vm678_vm2, %v1848_v4  ;;  %v2399_v4 = vld [vmem:[%s3326_s12 + $0x58] sm:$0xff] }
 0xef1   : > { %2631 = vmatprep.mubr.msk.bf16.mxu1 %vm2752_vm1, %v2751_v10  ;;  %2628 = vmatpush3.bf16.msra.mxu1 %v2009_v52  ;;  %v2410_v52 = vld [vmem:[%s3329_s15 + $0x1] ss:$0 sm:$0xff] }
 0xef2   : > { %2629 = vmatprep.subr.bf16.mxu1 %v2751_v10 }
 0xf86   : > { %v1555_v5 = vpop.f32.mrb[28].mxu1 }
 0xf87   : > { %v2581_v6 = vpop.f32.mrb[29].mxu1 }
 0xf88   : > { %v1558_v7 = vpop.f32.mrb[30].mxu1  ;;  %v2400_v6 = vld [vmem:[%s3326_s12 + $0x60] sm:$0xff] }
 0xf89   : > { %v2582_v8 = vpop.f32.mrb[31].mxu1  ;;  %v2401_v7 = vld [vmem:[%s3326_s12 + $0x68] sm:$0xff] }
 0xf8a   : > { %v2079_v8 = vpack.c.bf16 %v2401_v7, %v2400_v6 }
 0xf97   : > { %v1667_v9 = vpop.f32.mrb[32].mxu1 }
 0xf98   : > { %1898 = vrot.lane.b32.xlu0 %v1667_v9, %s3354_s20  ;;  %v2593_v11 = vpop.f32.mrb[33].mxu1  ;;  %v2402_v9 = vld [vmem:[%s3326_s12 + $0x70] sm:$0xff]  ;;  %s582_s20 = scalar_lea.vmem %s3332_s18, %s3358_s28 }
 0xf99   : > { %v1670_v12 = vpop.f32.mrb[34].mxu1  ;;  %v2403_v11 = vld [vmem:[%s3326_s12 + $0x78] sm:$0xff] }
 0xf9a   : > { %v2594_v13 = vpop.f32.mrb[35].mxu1  ;;  %v2080_v12 = vpack.c.bf16 %v2403_v11, %v2402_v9 }
 0xf9b   : > { %v2394_v13 = vld [vmem:[%s3325_s11 + $0x1] ss:$0 sm:$0xff] }
 0xfbb   : > { %v1779_v20 = vpop.f32.mrb[36].mxu1 }
 0xfbc   : > { %1902 = vrot.lane.b32.xlu1 %v1779_v20, %s3355_s23  ;;  %v2605_v21 = vpop.f32.mrb[37].mxu1 }
 0xfbd   : > { %v1782_v23 = vpop.f32.mrb[38].mxu1 }
 0xfbe   : > { %v2606_v24 = vpop.f32.mrb[39].mxu1 }
 0xfc3   : > { %v1891_v25 = vpop.f32.mrb[40].mxu1 }
 0xfc4   : > { %1906 = vrot.lane.b32.xlu0 %v1891_v25, %s3356_s24  ;;  %v2617_v26 = vpop.f32.mrb[41].mxu1 }
 0xfc5   : > { %v1894_v27 = vpop.f32.mrb[42].mxu1  ;;  %v2405_v26 = vld [vmem:[%s3327_s13 + $0x1] ss:$0 sm:$0xff] }
 0xfc6   : > { %v2618_v28 = vpop.f32.mrb[43].mxu1 }
0x100a   : > { %v1899_v30 = vpop.permute.xlu0 %1898 }
0x100b   : > { %v1909_v32 = vsel %vm678_vm2, %v1555_v5, %v1899_v30  ;;  %v2078_v5 = vpack.c.bf16 %v2399_v4, %v2398_v3 }
0x102e   : > { %v1903_v31 = vpop.permute.xlu1 %1902 }
0x102f   : > { %v1910_v33 = vsel %vm1143_vm4, %v1909_v32, %v1903_v31 }
0x1036   : > { %v1907_v34 = vpop.permute.xlu0 %1906 }
0x1037   : > { %v1911_v35 = vsel %vm1145_vm5, %v1910_v33, %v1907_v34 }
0x1038   : > { %v1917_v36 = vpack.c.bf16 %v1911_v35, %v1911_v35 }
0x103a   : > { %2624 = vmatmul.mubr.msk.bf16.vlgmr.msra.gmra.mrb[40].mxu0 %vm587_vm0, %v1917_v36 }
0x103b   : > { %2643 = vmatprep.mubr.msk.bf16.mxu0 %vm2752_vm1, %v2751_v10  ;;  %2636 = vmatpush3.bf16.msra.mxu0 %v2077_v2 }
0x103c   : > { %2637 = vmatprep.subr.bf16.mxu0 %v2751_v10 }
0x103f   : > { %2638 = vmatpush3.bf16.msra.mxu0 %v2078_v5 }
0x1040   : > { %2639 = vmatprep.subr.bf16.mxu0 %v2751_v10 }
0x1043   : > { %2640 = vmatpush3.bf16.msra.mxu0 %v2079_v8 }
0x1044   : > { %2641 = vmatprep.subr.bf16.mxu0 %v2751_v10 }
0x1047   : > { %2642 = vmatpush3.bf16.msra.mxu0 %v2080_v12 }
0x110d   : > { %v1965_v29 = vpop.f32.mrb[40].mxu0 }
0x110e   : > { %v1966_v22 = vadd.f32 %v2383_v42, %v1965_v29  ;;  %v2625_v37 = vpop.f32.mrb[41].mxu0 }
0x110f   : > { %v1968_v39 = vpop.f32.mrb[42].mxu0  ;;  %v2165_v37 = vld [vmem:[%s3330_s16 + $0x8] sm:$0xff] }
0x1110   : > { %v2626_v40 = vpop.f32.mrb[43].mxu0  ;;  %v1971_v41 = vadd.f32 %v1966_v22, %v3109_v38  ;;  %v2391_v38 = vld [vmem:[%s3324_s10 + $0x30] sm:$0xff] }
0x1111   : > { %v2010_v46 = vpack.c.bf16 %v2392_v53, %v2391_v38  ;;  %v2767_v40 = vmov 0.0|0.0  }
0x1112   : > { %v1976_v43 = vsel %vm587_vm0, %v1971_v41, 0.0  ;;  %2658 = vmatprep.subr.bf16.mxu0 %v2767_v40 }
0x1113   : > { %1977 = vadd.xlane.f32.xlu1 %v1976_v43  ;;  %2630 = vmatpush3.bf16.msra.mxu1 %v2010_v46  ;;  %v2167_v43 = vld [vmem:[%s3330_s16 + $0x18] sm:$0xff]  ;;  %v2168_v46 = vld [vmem:[%s3331_s17] sm:$0x1] }
0x11a0   : > { %v1978_v44 = vpop.xlane.xlu1 %1977 }
0x11a1   : > { %v1979_v45 = vmul.f32 0.03125, %v1978_v44 }
0x11a3   : > { %v1980_v47 = vsub.f32 %v1971_v41, %v1979_v45  ;;  %v2166_v41 = vld [vmem:[%s3330_s16 + $0x10] sm:$0xff] }
0x11a4   : > { %v2662_v44 = vpack.c.bf16 %v2167_v43, %v2166_v41 }
0x11a5   : > { %v1981_v48 = vmul.f32 %v1980_v47, %v1980_v47 }
0x11a7   : > { %v1982_v49 = vsel %vm587_vm0, %v1981_v48, 0.0 }
0x11a8   : > { %1983 = vadd.xlane.f32.xlu0 %v1982_v49 }
0x1235   : > { %v1984_v54 = vpop.xlane.xlu0 %1983 }
0x1236   : > { %v1985_v55 = vmul.f32 0.03125, %v1984_v54 }
0x1238   : > { %v1986_v56 = vadd.f32 1e-12, %v1985_v55 }
0x123a   : > { %2729 = vrsqrt.f32 %v1986_v56 }
0x1244   : > { %v2730_v57 = vpop.eup %2729 }
0x1245   : > { %v1988_v59 = vmul.f32 %v2730_v57, %v1980_v47 }
0x1247   : > { %v1995_v61 = vmul.f32 %v2387_v58, %v1988_v59 }
0x1249   : > { %v2002_v62 = vadd.f32 %v2388_v60, %v1995_v61 }
0x124b   : > { %v2008_v63 = vpack.c.bf16 %v2002_v62, %v2002_v62 }
0x124d   : > { %2632 = vmatmul.mubr.msk.bf16.vlgmr.msra.gmra.mrb[44].mxu1 %vm587_vm0, %v2008_v63 }
0x1320   : > { %v2056_v14 = vpop.f32.mrb[44].mxu1 }
0x1321   : > { %v2057_v15 = vadd.f32 %v2394_v13, %v2056_v14  ;;  %v2633_v16 = vpop.f32.mrb[45].mxu1 }
0x1322   : > { %v2059_v17 = vpop.f32.mrb[46].mxu1 }
0x1323   : > { %v2063_v18 = vmul.f32 0.70710677, %v2057_v15  ;;  %v2634_v19 = vpop.f32.mrb[47].mxu1  ;;  %v2062_v21 = vmul.f32 0.5, %v2057_v15 }
0x1325   : > { %2731 = verf.f32 %v2063_v18 }
0x132f   : > { %v2732_v20 = vpop.eup %2731 }
0x1330   : > { %v2065_v23 = vadd.f32 1.0, %v2732_v20 }
0x1332   : > { %v2066_v24 = vmul.f32 %v2065_v23, %v2062_v21 }
0x1334   : > { %v2076_v25 = vpack.c.bf16 %v2066_v24, %v2066_v24 }
0x1336   : > { %2644 = vmatmul.mubr.msk.bf16.vlgmr.msra.gmra.mrb[44].mxu0 %vm1316_vm6, %v2076_v25 }
0x1337   : > { %2655 = vmatprep.mubr.msk.f32.mxu0 %vm2752_vm1, %v2751_v10  ;;  %v2164_v10 = vld [vmem:[%s3330_s16] sm:$0xff] }
0x1338   : > { %v2659_v39 = vpack.c.bf16 %v2165_v37, %v2164_v10 }
0x133a   : > { %2660 = vmatpush3.bf16.msra.mxu0 %v2659_v39 }
0x133b   : > { %2661 = vmatprep.subr.bf16.mxu0 %v2767_v40 }
0x133e   : > { %2663 = vmatpush3.bf16.msra.mxu0 %v2662_v44 }
0x1409   : > { %v2126_v27 = vpop.f32.mrb[44].mxu0 }
0x140a   : > { %v2127_v28 = vadd.f32 %v2405_v26, %v2126_v27  ;;  %v2645_v30 = vpop.f32.mrb[45].mxu0 }
0x140b   : > { %v2129_v31 = vpop.f32.mrb[46].mxu0 }
0x140c   : > { %v2646_v32 = vpop.f32.mrb[47].mxu0  ;;  %v2132_v33 = vadd.f32 %v2127_v28, %v2002_v62 }
0x140e   : > { %v2137_v34 = vsel %vm587_vm0, %v2132_v33, 0.0 }
0x140f   : > { %2138 = vadd.xlane.f32.xlu0 %v2137_v34 }
0x149c   : > { %v2139_v35 = vpop.xlane.xlu0 %2138 }
0x149d   : > { %v2140_v36 = vmul.f32 0.03125, %v2139_v35 }
0x149f   : > { %v2141_v42 = vsub.f32 %v2132_v33, %v2140_v36 }
0x14a1   : > { %v2142_v29 = vmul.f32 %v2141_v42, %v2141_v42 }
0x14a3   : > { %v2143_v22 = vsel %vm587_vm0, %v2142_v29, 0.0 }
0x14a4   : > { %2144 = vadd.xlane.f32.xlu1 %v2143_v22 }
0x1531   : > { %v2145_v45 = vpop.xlane.xlu1 %2144 }
0x1532   : > { %v2146_v47 = vmul.f32 0.03125, %v2145_v45 }
0x1534   : > { %v2147_v48 = vadd.f32 1e-12, %v2146_v47 }
0x1536   : > { %2733 = vrsqrt.f32 %v2147_v48 }
0x1540   : > { %v2734_v49 = vpop.eup %2733 }
0x1541   : > { %v2149_v51 = vmul.f32 %v2734_v49, %v2141_v42 }
0x1543   : > { %v2156_v38 = vmul.f32 %v2409_v50, %v2149_v51 }
0x1545   : > { %v2163_v53 = vadd.f32 %v2410_v52, %v2156_v38 }
0x1547   : > { %2656 = vmatmul.mubr.msk.f32.vlgmr.msra.gmra.mrb[48].mxu0 %vm587_vm0, %v2163_v53 }
0x161a   : > { %v2238_v54 = vpop.f32.mrb[48].mxu0 }
0x161b   : > { %v2239_v55 = vadd.f32 %v2238_v54, %v2168_v46  ;;  %v2657_v56 = vpop.f32.mrb[49].mxu0 }
0x161d   : > { %v2242_v57 = vmul.f32 %v2239_v55, %v2239_v55 }
0x161f   : > { %2258 = vrot.lane.b32.xlu1 %v2242_v57, %s2754_s2  ;;  %v2244_v58 = vsel %vm2243_vm7, %v2242_v57, 0.0 }
0x1620   : > { %2245 = vadd.xlane.f32.xlu0 %v2244_v58 }
0x1691   : > { %v2259_v59 = vpop.permute.xlu1 %2258 }
0x1692   : > { %v2262_v60 = vsel %vm2261_vm8, %v2259_v59, 0.0 }
0x1693   : > { %2263 = vadd.xlane.f32.xlu0 %v2262_v60 }
0x16ad   : > { %v2246_v61 = vpop.xlane.xlu0 %2245 }
0x16ae   : > { %2735 = vrsqrt.f32 %v2246_v61  ;;  %vm2249_vm9 = vcmp.eq.f32.partialorder %v2246_v61, inf  ;;  %v2252_v2 = vand.u32 2147483648, %v2246_v61  ;;  %vm2251_vm10 = vcmp.eq.f32.partialorder %v2246_v61, 0.0 }
0x16b8   : > { %v2736_v62 = vpop.eup %2735 }
0x16b9   : > { %v2248_v0 = vmul.f32 %v2736_v62, %v2246_v61 }
0x16bb   : > { %v2250_v1 = vsel %vm2249_vm9, %v2246_v61, %v2248_v0 }
0x16bc   : > { %v2253_v3 = vsel %vm2251_vm10, %v2252_v2, %v2250_v1 }
0x16bd   : > { %v2254_v5 = vmax.f32 %v2253_v3, 1e-12 }
0x1720   : > { %v2264_v63 = vpop.xlane.xlu0 %2263 }
0x1721   : > { %2737 = vrsqrt.f32 %v2264_v63  ;;  %vm2267_vm11 = vcmp.eq.f32.partialorder %v2264_v63, inf  ;;  %v2270_v7 = vand.u32 2147483648, %v2264_v63  ;;  %vm2269_vm12 = vcmp.eq.f32.partialorder %v2264_v63, 0.0 }
0x1722   : > { %2739 = vrcp.f32 %v2254_v5 }
0x172b   : > { %v2738_v4 = vpop.eup %2737 }
0x172c   : > { %v2266_v6 = vmul.f32 %v2738_v4, %v2264_v63  ;;  %v2740_v12 = vpop.eup %2739 }
0x172d   : > { %v2256_v14 = vmul.f32 %v2740_v12, %v2239_v55 }
0x172e   : > { %v2268_v8 = vsel %vm2267_vm11, %v2264_v63, %v2266_v6 }
0x172f   : > { %v2271_v9 = vsel %vm2269_vm12, %v2270_v7, %v2268_v8 }
0x1730   : > { %v2272_v11 = vmax.f32 %v2271_v9, 1e-12 }
0x1732   : > { %2741 = vrcp.f32 %v2272_v11 }
0x173c   : > { %v2742_v13 = vpop.eup %2741 }
0x173d   : > { %v2274_v15 = vmul.f32 %v2742_v13, %v2239_v55 }
0x173f   : > { %v2275_v16 = vsel %vm587_vm0, %v2256_v14, %v2274_v15 }
0x1740   : > { %2277 = vst.msk [vmem:[%s582_s20] sm:$0x1] %vm2276_vm13, %v2275_v16 }
0x1741 PF: > { %s28_s27 = sadd.s32 1, %s2749_s27  }
0x1742   : > { %p25_p4 = scmp.ge.s32.totalorder %s28_s27, 4  }
0x1744   :  { %27 = sbr.rel (!%p25_p4) target bundleno = 4 (0x4), region = 137 }

</bundles_post_ra>
